<compile_context>
chip_gen: v7x
topology: tpu7x:2x2x1
jax: 0.10.0
libtpu: 0.0.40
codegen_flags: <defaults>
</compile_context>

<pallas_src>
import jax
import jax.numpy as jnp
from jax.experimental import pallas as pl
from jax.experimental.pallas import tpu as pltpu


# ----------------------------------------------------------------------------
# Fused Pallas kernel: 8 GCN layers (relu) + log_softmax epilogue
# ----------------------------------------------------------------------------
def fused_gcn_kernel(x_ref, adj_ref, *refs):
    """refs = (w1, b1, w2, b2, ..., w8, b8, o_ref)."""
    o_ref = refs[-1]
    wb_refs = refs[:-1]
    n_layers = len(wb_refs) // 2

    adj = adj_ref[...]                      # bf16, stays resident in VMEM
    h = x_ref[...].astype(jnp.float32)      # running activation (VMEM only)

    # Python-unrolled layer loop (shapes differ per layer).
    for i in range(n_layers):
        w = wb_refs[2 * i][...]             # bf16  (F_in, F_out)
        b = wb_refs[2 * i + 1][...]         # f32   (1, F_out)
        # support = H @ W       (MXU, bf16 in / f32 accumulate)
        support = jnp.dot(h.astype(jnp.bfloat16), w,
                          preferred_element_type=jnp.float32)
        # out = A @ support + b (MXU + VPU)
        out = jnp.dot(adj, support.astype(jnp.bfloat16),
                      preferred_element_type=jnp.float32)
        h = jnp.maximum(out + b, 0.0)       # ReLU

    # log_softmax over the feature axis (stable, EUP exp/log).
    m = jnp.max(h, axis=1, keepdims=True)
    s = h - m
    lse = jnp.log(jnp.sum(jnp.exp(s), axis=1, keepdims=True))
    o_ref[...] = (s - lse).astype(o_ref.dtype)


# ----------------------------------------------------------------------------
# Wrapper: single pallas_call, whole-array blocks (everything fits in VMEM
# at these sizes: ~2 MiB bf16 weights + tiny activations).
# ----------------------------------------------------------------------------
def _full_spec(shape):
    return pl.BlockSpec(shape, lambda: tuple(0 for _ in shape))


def gcn_w_forward(x, adj, params):
    """params: list of (W bf16 (F_in,F_out), b f32 (1,F_out)); gc9 unused."""
    layer_params = params[:8]
    n = x.shape[0]
    f_out_final = layer_params[-1][0].shape[1]

    adj_bf16 = adj.astype(jnp.bfloat16)

    inputs = [x, adj_bf16]
    in_specs = [_full_spec(x.shape), _full_spec(adj_bf16.shape)]
    for (w, b) in layer_params:
        inputs.append(w)
        in_specs.append(_full_spec(w.shape))
        inputs.append(b)
        in_specs.append(_full_spec(b.shape))

    return pl.pallas_call(
        fused_gcn_kernel,
        out_shape=jax.ShapeDtypeStruct((n, f_out_final), jnp.float32),
        in_specs=in_specs,
        out_specs=_full_spec((n, f_out_final)),
        compiler_params=pltpu.CompilerParams(vmem_limit_bytes=32 << 20),
    )(*inputs)


# ----------------------------------------------------------------------------
# Parameter init (deterministic; mirrors GraphConvolution's uniform init with
# stdv = 1/sqrt(out_features)).  Weights stored bf16 (MXU-native), biases f32
# and already shaped (1, F_out) so no per-call reshape/broadcast is needed.
# ----------------------------------------------------------------------------
def init_gcn_w_params(key, nfeat, nclass):
    dims = [nfeat, 512, 512, 512, 512, 256, 128, 128, 64, nclass]
    params = []
    for i in range(len(dims) - 1):
        f_in, f_out = dims[i], dims[i + 1]
        stdv = 1.0 / jnp.sqrt(jnp.float32(f_out))
        key, kw, kb = jax.random.split(key, 3)
        w = jax.random.uniform(kw, (f_in, f_out), jnp.float32, -stdv, stdv)
        b = jax.random.uniform(kb, (f_out,), jnp.float32, -stdv, stdv)
        params.append((w.astype(jnp.bfloat16), b.reshape(1, f_out)))
    return params  # params[8] corresponds to gc9 (unused in forward)


# ----------------------------------------------------------------------------
# Demo
# ----------------------------------------------------------------------------
if __name__ == "__main__":
    key = jax.random.PRNGKey(0)
    N = 8          # number of graph nodes
    NFEAT = 32     # input feature dim
    NCLASS = 16    # only used by (unused) gc9

    k_x, k_a, k_p = jax.random.split(key, 3)
    x = jax.random.normal(k_x, (N, NFEAT), jnp.float32)

    # Symmetric row-normalized adjacency with self-loops (dense).
    a = (jax.random.uniform(k_a, (N, N)) > 0.5).astype(jnp.float32)
    a = jnp.maximum(a, a.T) + jnp.eye(N, dtype=jnp.float32)
    deg = jnp.sum(a, axis=1, keepdims=True)
    adj = a / deg

    params = init_gcn_w_params(k_p, NFEAT, NCLASS)

    out = gcn_w_forward(x, adj, params)
    out = jax.block_until_ready(out)

    assert out.shape == (N, 64)
    # log_softmax rows should sum to ~1 in probability space
    assert jnp.allclose(jnp.sum(jnp.exp(out), axis=1), 1.0, atol=1e-3)
    assert jnp.all(jnp.isfinite(out))
    print("KERNEL_OK")
</pallas_src>

<mosaic_0001>
module attributes {stable_mosaic.version = 11 : i64} {
  func.func @fused_gcn_kernel(%arg0: memref<8x32xf32, #tpu.memory_space<vmem>>, %arg1: memref<8x8xbf16, #tpu.memory_space<vmem>>, %arg2: memref<32x512xbf16, #tpu.memory_space<vmem>>, %arg3: memref<1x512xf32, #tpu.memory_space<vmem>>, %arg4: memref<512x512xbf16, #tpu.memory_space<vmem>>, %arg5: memref<1x512xf32, #tpu.memory_space<vmem>>, %arg6: memref<512x512xbf16, #tpu.memory_space<vmem>>, %arg7: memref<1x512xf32, #tpu.memory_space<vmem>>, %arg8: memref<512x512xbf16, #tpu.memory_space<vmem>>, %arg9: memref<1x512xf32, #tpu.memory_space<vmem>>, %arg10: memref<512x256xbf16, #tpu.memory_space<vmem>>, %arg11: memref<1x256xf32, #tpu.memory_space<vmem>>, %arg12: memref<256x128xbf16, #tpu.memory_space<vmem>>, %arg13: memref<1x128xf32, #tpu.memory_space<vmem>>, %arg14: memref<128x128xbf16, #tpu.memory_space<vmem>>, %arg15: memref<1x128xf32, #tpu.memory_space<vmem>>, %arg16: memref<128x64xbf16, #tpu.memory_space<vmem>>, %arg17: memref<1x64xf32, #tpu.memory_space<vmem>>, %arg18: memref<8x64xf32, #tpu.memory_space<vmem>>) attributes {dimension_semantics = [], scalar_prefetch = 0 : i64, scratch_operands = 0 : i64, tpu.core_type = #tpu.core_type<tc>} {
    %c0 = arith.constant 0 : index
    %c0_0 = arith.constant 0 : index
    %0 = vector.load %arg1[%c0, %c0_0] : memref<8x8xbf16, #tpu.memory_space<vmem>>, vector<8x8xbf16>
    %c0_1 = arith.constant 0 : index
    %c0_2 = arith.constant 0 : index
    %1 = vector.load %arg0[%c0_1, %c0_2] : memref<8x32xf32, #tpu.memory_space<vmem>>, vector<8x32xf32>
    %c0_3 = arith.constant 0 : index
    %c0_4 = arith.constant 0 : index
    %2 = vector.load %arg2[%c0_3, %c0_4] : memref<32x512xbf16, #tpu.memory_space<vmem>>, vector<32x512xbf16>
    %c0_5 = arith.constant 0 : index
    %c0_6 = arith.constant 0 : index
    %3 = vector.load %arg3[%c0_5, %c0_6] : memref<1x512xf32, #tpu.memory_space<vmem>>, vector<1x512xf32>
    %4 = arith.truncf %1 : vector<8x32xf32> to vector<8x32xbf16>
    %cst = arith.constant dense<0.000000e+00> : vector<8x512xf32>
    %5 = tpu.matmul %4, %2, %cst {dimension_numbers = #tpu.dot_dimension_numbers<[1], [0], [0], [1], [0, 0, 1, 1], [], []>} : vector<8x32xbf16>, vector<32x512xbf16>, vector<8x512xf32> -> vector<8x512xf32>
    %6 = arith.truncf %5 : vector<8x512xf32> to vector<8x512xbf16>
    %cst_7 = arith.constant dense<0.000000e+00> : vector<8x512xf32>
    %7 = tpu.matmul %0, %6, %cst_7 {dimension_numbers = #tpu.dot_dimension_numbers<[1], [0], [0], [1], [0, 0, 1, 1], [], []>} : vector<8x8xbf16>, vector<8x512xbf16>, vector<8x512xf32> -> vector<8x512xf32>
    %8 = vector.broadcast %3 : vector<1x512xf32> to vector<8x512xf32>
    %9 = arith.addf %7, %8 : vector<8x512xf32>
    %cst_8 = arith.constant 0.000000e+00 : f32
    %10 = vector.broadcast %cst_8 : f32 to vector<8x512xf32>
    %11 = arith.maximumf %9, %10 : vector<8x512xf32>
    %c0_9 = arith.constant 0 : index
    %c0_10 = arith.constant 0 : index
    %12 = vector.load %arg4[%c0_9, %c0_10] : memref<512x512xbf16, #tpu.memory_space<vmem>>, vector<512x512xbf16>
    %c0_11 = arith.constant 0 : index
    %c0_12 = arith.constant 0 : index
    %13 = vector.load %arg5[%c0_11, %c0_12] : memref<1x512xf32, #tpu.memory_space<vmem>>, vector<1x512xf32>
    %14 = arith.truncf %11 : vector<8x512xf32> to vector<8x512xbf16>
    %cst_13 = arith.constant dense<0.000000e+00> : vector<8x512xf32>
    %15 = tpu.matmul %14, %12, %cst_13 {dimension_numbers = #tpu.dot_dimension_numbers<[1], [0], [0], [1], [0, 0, 1, 1], [], []>} : vector<8x512xbf16>, vector<512x512xbf16>, vector<8x512xf32> -> vector<8x512xf32>
    %16 = arith.truncf %15 : vector<8x512xf32> to vector<8x512xbf16>
    %cst_14 = arith.constant dense<0.000000e+00> : vector<8x512xf32>
    %17 = tpu.matmul %0, %16, %cst_14 {dimension_numbers = #tpu.dot_dimension_numbers<[1], [0], [0], [1], [0, 0, 1, 1], [], []>} : vector<8x8xbf16>, vector<8x512xbf16>, vector<8x512xf32> -> vector<8x512xf32>
    %18 = vector.broadcast %13 : vector<1x512xf32> to vector<8x512xf32>
    %19 = arith.addf %17, %18 : vector<8x512xf32>
    %cst_15 = arith.constant 0.000000e+00 : f32
    %20 = vector.broadcast %cst_15 : f32 to vector<8x512xf32>
    %21 = arith.maximumf %19, %20 : vector<8x512xf32>
    %c0_16 = arith.constant 0 : index
    %c0_17 = arith.constant 0 : index
    %22 = vector.load %arg6[%c0_16, %c0_17] : memref<512x512xbf16, #tpu.memory_space<vmem>>, vector<512x512xbf16>
    %c0_18 = arith.constant 0 : index
    %c0_19 = arith.constant 0 : index
    %23 = vector.load %arg7[%c0_18, %c0_19] : memref<1x512xf32, #tpu.memory_space<vmem>>, vector<1x512xf32>
    %24 = arith.truncf %21 : vector<8x512xf32> to vector<8x512xbf16>
    %cst_20 = arith.constant dense<0.000000e+00> : vector<8x512xf32>
    %25 = tpu.matmul %24, %22, %cst_20 {dimension_numbers = #tpu.dot_dimension_numbers<[1], [0], [0], [1], [0, 0, 1, 1], [], []>} : vector<8x512xbf16>, vector<512x512xbf16>, vector<8x512xf32> -> vector<8x512xf32>
    %26 = arith.truncf %25 : vector<8x512xf32> to vector<8x512xbf16>
    %cst_21 = arith.constant dense<0.000000e+00> : vector<8x512xf32>
    %27 = tpu.matmul %0, %26, %cst_21 {dimension_numbers = #tpu.dot_dimension_numbers<[1], [0], [0], [1], [0, 0, 1, 1], [], []>} : vector<8x8xbf16>, vector<8x512xbf16>, vector<8x512xf32> -> vector<8x512xf32>
    %28 = vector.broadcast %23 : vector<1x512xf32> to vector<8x512xf32>
    %29 = arith.addf %27, %28 : vector<8x512xf32>
    %cst_22 = arith.constant 0.000000e+00 : f32
    %30 = vector.broadcast %cst_22 : f32 to vector<8x512xf32>
    %31 = arith.maximumf %29, %30 : vector<8x512xf32>
    %c0_23 = arith.constant 0 : index
    %c0_24 = arith.constant 0 : index
    %32 = vector.load %arg8[%c0_23, %c0_24] : memref<512x512xbf16, #tpu.memory_space<vmem>>, vector<512x512xbf16>
    %c0_25 = arith.constant 0 : index
    %c0_26 = arith.constant 0 : index
    %33 = vector.load %arg9[%c0_25, %c0_26] : memref<1x512xf32, #tpu.memory_space<vmem>>, vector<1x512xf32>
    %34 = arith.truncf %31 : vector<8x512xf32> to vector<8x512xbf16>
    %cst_27 = arith.constant dense<0.000000e+00> : vector<8x512xf32>
    %35 = tpu.matmul %34, %32, %cst_27 {dimension_numbers = #tpu.dot_dimension_numbers<[1], [0], [0], [1], [0, 0, 1, 1], [], []>} : vector<8x512xbf16>, vector<512x512xbf16>, vector<8x512xf32> -> vector<8x512xf32>
    %36 = arith.truncf %35 : vector<8x512xf32> to vector<8x512xbf16>
    %cst_28 = arith.constant dense<0.000000e+00> : vector<8x512xf32>
    %37 = tpu.matmul %0, %36, %cst_28 {dimension_numbers = #tpu.dot_dimension_numbers<[1], [0], [0], [1], [0, 0, 1, 1], [], []>} : vector<8x8xbf16>, vector<8x512xbf16>, vector<8x512xf32> -> vector<8x512xf32>
    %38 = vector.broadcast %33 : vector<1x512xf32> to vector<8x512xf32>
    %39 = arith.addf %37, %38 : vector<8x512xf32>
    %cst_29 = arith.constant 0.000000e+00 : f32
    %40 = vector.broadcast %cst_29 : f32 to vector<8x512xf32>
    %41 = arith.maximumf %39, %40 : vector<8x512xf32>
    %c0_30 = arith.constant 0 : index
    %c0_31 = arith.constant 0 : index
    %42 = vector.load %arg10[%c0_30, %c0_31] : memref<512x256xbf16, #tpu.memory_space<vmem>>, vector<512x256xbf16>
    %c0_32 = arith.constant 0 : index
    %c0_33 = arith.constant 0 : index
    %43 = vector.load %arg11[%c0_32, %c0_33] : memref<1x256xf32, #tpu.memory_space<vmem>>, vector<1x256xf32>
    %44 = arith.truncf %41 : vector<8x512xf32> to vector<8x512xbf16>
    %cst_34 = arith.constant dense<0.000000e+00> : vector<8x256xf32>
    %45 = tpu.matmul %44, %42, %cst_34 {dimension_numbers = #tpu.dot_dimension_numbers<[1], [0], [0], [1], [0, 0, 1, 1], [], []>} : vector<8x512xbf16>, vector<512x256xbf16>, vector<8x256xf32> -> vector<8x256xf32>
    %46 = arith.truncf %45 : vector<8x256xf32> to vector<8x256xbf16>
    %cst_35 = arith.constant dense<0.000000e+00> : vector<8x256xf32>
    %47 = tpu.matmul %0, %46, %cst_35 {dimension_numbers = #tpu.dot_dimension_numbers<[1], [0], [0], [1], [0, 0, 1, 1], [], []>} : vector<8x8xbf16>, vector<8x256xbf16>, vector<8x256xf32> -> vector<8x256xf32>
    %48 = vector.broadcast %43 : vector<1x256xf32> to vector<8x256xf32>
    %49 = arith.addf %47, %48 : vector<8x256xf32>
    %cst_36 = arith.constant 0.000000e+00 : f32
    %50 = vector.broadcast %cst_36 : f32 to vector<8x256xf32>
    %51 = arith.maximumf %49, %50 : vector<8x256xf32>
    %c0_37 = arith.constant 0 : index
    %c0_38 = arith.constant 0 : index
    %52 = vector.load %arg12[%c0_37, %c0_38] : memref<256x128xbf16, #tpu.memory_space<vmem>>, vector<256x128xbf16>
    %c0_39 = arith.constant 0 : index
    %c0_40 = arith.constant 0 : index
    %53 = vector.load %arg13[%c0_39, %c0_40] : memref<1x128xf32, #tpu.memory_space<vmem>>, vector<1x128xf32>
    %54 = arith.truncf %51 : vector<8x256xf32> to vector<8x256xbf16>
    %cst_41 = arith.constant dense<0.000000e+00> : vector<8x128xf32>
    %55 = tpu.matmul %54, %52, %cst_41 {dimension_numbers = #tpu.dot_dimension_numbers<[1], [0], [0], [1], [0, 0, 1, 1], [], []>} : vector<8x256xbf16>, vector<256x128xbf16>, vector<8x128xf32> -> vector<8x128xf32>
    %56 = arith.truncf %55 : vector<8x128xf32> to vector<8x128xbf16>
    %cst_42 = arith.constant dense<0.000000e+00> : vector<8x128xf32>
    %57 = tpu.matmul %0, %56, %cst_42 {dimension_numbers = #tpu.dot_dimension_numbers<[1], [0], [0], [1], [0, 0, 1, 1], [], []>} : vector<8x8xbf16>, vector<8x128xbf16>, vector<8x128xf32> -> vector<8x128xf32>
    %58 = vector.broadcast %53 : vector<1x128xf32> to vector<8x128xf32>
    %59 = arith.addf %57, %58 : vector<8x128xf32>
    %cst_43 = arith.constant 0.000000e+00 : f32
    %60 = vector.broadcast %cst_43 : f32 to vector<8x128xf32>
    %61 = arith.maximumf %59, %60 : vector<8x128xf32>
    %c0_44 = arith.constant 0 : index
    %c0_45 = arith.constant 0 : index
    %62 = vector.load %arg14[%c0_44, %c0_45] : memref<128x128xbf16, #tpu.memory_space<vmem>>, vector<128x128xbf16>
    %c0_46 = arith.constant 0 : index
    %c0_47 = arith.constant 0 : index
    %63 = vector.load %arg15[%c0_46, %c0_47] : memref<1x128xf32, #tpu.memory_space<vmem>>, vector<1x128xf32>
    %64 = arith.truncf %61 : vector<8x128xf32> to vector<8x128xbf16>
    %cst_48 = arith.constant dense<0.000000e+00> : vector<8x128xf32>
    %65 = tpu.matmul %64, %62, %cst_48 {dimension_numbers = #tpu.dot_dimension_numbers<[1], [0], [0], [1], [0, 0, 1, 1], [], []>} : vector<8x128xbf16>, vector<128x128xbf16>, vector<8x128xf32> -> vector<8x128xf32>
    %66 = arith.truncf %65 : vector<8x128xf32> to vector<8x128xbf16>
    %cst_49 = arith.constant dense<0.000000e+00> : vector<8x128xf32>
    %67 = tpu.matmul %0, %66, %cst_49 {dimension_numbers = #tpu.dot_dimension_numbers<[1], [0], [0], [1], [0, 0, 1, 1], [], []>} : vector<8x8xbf16>, vector<8x128xbf16>, vector<8x128xf32> -> vector<8x128xf32>
    %68 = vector.broadcast %63 : vector<1x128xf32> to vector<8x128xf32>
    %69 = arith.addf %67, %68 : vector<8x128xf32>
    %cst_50 = arith.constant 0.000000e+00 : f32
    %70 = vector.broadcast %cst_50 : f32 to vector<8x128xf32>
    %71 = arith.maximumf %69, %70 : vector<8x128xf32>
    %c0_51 = arith.constant 0 : index
    %c0_52 = arith.constant 0 : index
    %72 = vector.load %arg16[%c0_51, %c0_52] : memref<128x64xbf16, #tpu.memory_space<vmem>>, vector<128x64xbf16>
    %c0_53 = arith.constant 0 : index
    %c0_54 = arith.constant 0 : index
    %73 = vector.load %arg17[%c0_53, %c0_54] : memref<1x64xf32, #tpu.memory_space<vmem>>, vector<1x64xf32>
    %74 = arith.truncf %71 : vector<8x128xf32> to vector<8x128xbf16>
    %cst_55 = arith.constant dense<0.000000e+00> : vector<8x64xf32>
    %75 = tpu.matmul %74, %72, %cst_55 {dimension_numbers = #tpu.dot_dimension_numbers<[1], [0], [0], [1], [0, 0, 1, 1], [], []>} : vector<8x128xbf16>, vector<128x64xbf16>, vector<8x64xf32> -> vector<8x64xf32>
    %76 = arith.truncf %75 : vector<8x64xf32> to vector<8x64xbf16>
    %cst_56 = arith.constant dense<0.000000e+00> : vector<8x64xf32>
    %77 = tpu.matmul %0, %76, %cst_56 {dimension_numbers = #tpu.dot_dimension_numbers<[1], [0], [0], [1], [0, 0, 1, 1], [], []>} : vector<8x8xbf16>, vector<8x64xbf16>, vector<8x64xf32> -> vector<8x64xf32>
    %78 = vector.broadcast %73 : vector<1x64xf32> to vector<8x64xf32>
    %79 = arith.addf %77, %78 : vector<8x64xf32>
    %cst_57 = arith.constant 0.000000e+00 : f32
    %80 = vector.broadcast %cst_57 : f32 to vector<8x64xf32>
    %81 = arith.maximumf %79, %80 : vector<8x64xf32>
    %cst_58 = arith.constant dense<0xFF800000> : vector<8xf32>
    %82 = vector.multi_reduction <maximumf>, %81, %cst_58 [1] : vector<8x64xf32> to vector<8xf32>
    %83 = vector.shape_cast %82 : vector<8xf32> to vector<8x1xf32>
    %84 = vector.broadcast %83 : vector<8x1xf32> to vector<8x64xf32>
    %85 = arith.subf %81, %84 : vector<8x64xf32>
    %86 = math.exp %85 : vector<8x64xf32>
    %cst_59 = arith.constant dense<0.000000e+00> : vector<8xf32>
    %87 = vector.multi_reduction <add>, %86, %cst_59 [1] : vector<8x64xf32> to vector<8xf32>
    %88 = vector.shape_cast %87 : vector<8xf32> to vector<8x1xf32>
    %89 = math.log %88 : vector<8x1xf32>
    %90 = vector.broadcast %89 : vector<8x1xf32> to vector<8x64xf32>
    %91 = arith.subf %85, %90 : vector<8x64xf32>
    %c0_60 = arith.constant 0 : index
    %c0_61 = arith.constant 0 : index
    %92 = vector.load %arg18[%c0_60, %c0_61] : memref<8x64xf32, #tpu.memory_space<vmem>>, vector<8x64xf32>
    tpu.vector_store %arg18[%c0_60, %c0_61], %91 {strides = array<i32>} : memref<8x64xf32, #tpu.memory_space<vmem>>, vector<8x64xf32>,
    return
  }
}

</mosaic_0001>

<bundles_post_ra>
// kernel: tpu_custom_call.1
= control target key start
LH: loop header
LB: loop body
LE: loop exit
PB: predicated region body
PF: predicated region fallthrough
CT: control target
= control target key end

     0   :  { %s6964_s0 = inlined_call_operand.vmem [shape: f32[8,32], index: 0, kind: input, shape index: {}]   ;;  %s6965_s1 = inlined_call_operand.vmem [shape: bf16[8,8], index: 1, kind: input, shape index: {}]   ;;  %s6966_s2 = inlined_call_operand.hbm [shape: bf16[32,512], index: 2, kind: input, shape index: {}]   ;;  %s6967_s3 = inlined_call_operand.hbm [shape: f32[1,512], index: 3, kind: input, shape index: {}]   ;;  %s6968_s4 = inlined_call_operand.hbm [shape: bf16[512,512], index: 4, kind: input, shape index: {}]   ;;  %s6969_s5 = inlined_call_operand.hbm [shape: f32[1,512], index: 5, kind: input, shape index: {}]   ;;  %s6970_s6 = inlined_call_operand.hbm [shape: bf16[512,512], index: 6, kind: input, shape index: {}]   ;;  %s6971_s7 = inlined_call_operand.hbm [shape: f32[1,512], index: 7, kind: input, shape index: {}]   ;;  %s6972_s8 = inlined_call_operand.hbm [shape: bf16[512,512], index: 8, kind: input, shape index: {}]   ;;  %s6973_s9 = inlined_call_operand.hbm [shape: f32[1,512], index: 9, kind: input, shape index: {}]   ;;  %s6974_s10 = inlined_call_operand.hbm [shape: bf16[512,256], index: 10, kind: input, shape index: {}]   ;;  %s6975_s11 = inlined_call_operand.hbm [shape: f32[1,256], index: 11, kind: input, shape index: {}]   ;;  %s6976_s12 = inlined_call_operand.vmem [shape: bf16[256,128], index: 12, kind: input, shape index: {}]   ;;  %s6977_s13 = inlined_call_operand.vmem [shape: f32[1,128], index: 13, kind: input, shape index: {}]   ;;  %s6978_s14 = inlined_call_operand.hbm [shape: bf16[128,128], index: 14, kind: input, shape index: {}]   ;;  %s6979_s15 = inlined_call_operand.vmem [shape: f32[1,128], index: 15, kind: input, shape index: {}]   ;;  %s6980_s16 = inlined_call_operand.vmem [shape: bf16[128,64], index: 16, kind: input, shape index: {}]   ;;  %s6981_s17 = inlined_call_operand.vmem [shape: f32[1,64], index: 17, kind: input, shape index: {}]   ;;  %s6982_s18 = inlined_call_operand.hbm [shape: f32[8,64], index: 18, kind: output, shape index: {}]  }
   0x1   :  { %6985 = sst [smem:[#allocation28_spill]] %s6964_s0 }
   0x2   :  { %6986 = sst [smem:[#allocation29_spill]] %s6965_s1 }
   0x3   :  { %6987 = sst [smem:[#allocation30_spill]] %s6966_s2 }
   0x4   :  { %23 = vsyncpa [#allocation3], 0 }
   0x5   :  { %24 = vsyncpa [#allocation6], 0 }
   0x6   :  { %25 = vsyncpa [#allocation9], 0 }
   0x7   :  { %26 = vsyncpa [#allocation12], 0 }
   0x8   :  { %27 = vsyncpa [#allocation15], 0 }
   0x9   :  { %28 = vsyncpa [#allocation18], 0 }
   0xa   :  { %29 = vsyncpa [#allocation4], 0  ;;  %s6416_s27 = smov [#allocation5]   ;;  %s6417_s29 = smov [#allocation8]  }
   0xb   :  { %s52_s28 = sshll.u32 %s6416_s27, 4  ;;  %s74_s30 = sshll.u32 %s6417_s29, 4  ;;  %s53_s28 = int_to_ptr.vmem [resolvable:$true] %s52_s28  ;;  %s75_s30 = int_to_ptr.vmem [resolvable:$true] %s74_s30 }
   0xc   :  { %s6138_s1 = scalar_lea.hbm %s6967_s3, 64 }
   0xd   :  { %p6139_p0 = scmp.ne.s32.totalorder %s6967_s3, %s6138_s1  ;;  %p6142_p1 = scmp.lt.u32.totalorder %s6138_s1, %s6967_s3 }
   0xf   :  { %p6144_p2 = pnand %p6142_p1, %p6139_p0 }
  0x11   :  { %6147 = shalt.err (!%p6144_p2)
}
  0x12   :  { %s6148_s23 = scalar_lea.vmem %s53_s28, 64  ;;  %p6153_p4 = scmp.lt.s32.totalorder %s53_s28, %s53_s28 }
  0x13   :  { %p6149_p3 = scmp.ne.s32.totalorder %s53_s28, %s6148_s23  ;;  %p6154_p5 = scmp.lt.s32.totalorder %s6148_s23, %s6148_s23 }
  0x15   :  { %p6155_p6 = por %p6154_p5, %p6153_p4 }
  0x17   :  { %p6156_p7 = pnand %p6155_p6, %p6149_p3 }
  0x19   :  { %6159 = shalt.err (!%p6156_p7)
}
  0x1a   :  { %55 = dma.hbm_to_vmem [thread:$0]  %s6967_s3, 64, %s53_s28, [#allocation6]  }
  0x1b   :  { %s6160_s29 = scalar_lea.hbm %s6969_s5, 64 }
  0x1c   :  { %p6161_p8 = scmp.ne.s32.totalorder %s6969_s5, %s6160_s29  ;;  %p6164_p9 = scmp.lt.u32.totalorder %s6160_s29, %s6969_s5 }
  0x1e   :  { %p6166_p10 = pnand %p6164_p9, %p6161_p8 }
  0x20   :  { %6169 = shalt.err (!%p6166_p10)
}
  0x21   :  { %s6170_s21 = scalar_lea.vmem %s75_s30, 64  ;;  %p6175_p12 = scmp.lt.s32.totalorder %s75_s30, %s75_s30 }
  0x22   :  { %p6171_p11 = scmp.ne.s32.totalorder %s75_s30, %s6170_s21  ;;  %p6176_p13 = scmp.lt.s32.totalorder %s6170_s21, %s6170_s21 }
  0x24   :  { %p6177_p0 = por %p6176_p13, %p6175_p12 }
  0x26   :  { %p6178_p1 = pnand %p6177_p0, %p6171_p11 }
  0x28   :  { %6181 = shalt.err (!%p6178_p1)
}
  0x29   :  { %77 = dma.hbm_to_vmem [thread:$0]  %s6969_s5, 64, %s75_s30, [#allocation9]  }
  0x2a   :  { %s6418_s22 = smov [#allocation11]   ;;  %s6419_s23 = smov [#allocation14]  }
  0x2b   :  { %s96_s2 = sshll.u32 %s6418_s22, 4  ;;  %s118_s24 = sshll.u32 %s6419_s23, 4  ;;  %s97_s2 = int_to_ptr.vmem [resolvable:$true] %s96_s2  ;;  %s119_s24 = int_to_ptr.vmem [resolvable:$true] %s118_s24 }
  0x2c   :  { %s6182_s27 = scalar_lea.hbm %s6971_s7, 64 }
  0x2d   :  { %p6183_p2 = scmp.ne.s32.totalorder %s6971_s7, %s6182_s27  ;;  %p6186_p3 = scmp.lt.u32.totalorder %s6182_s27, %s6971_s7 }
  0x2f   :  { %p6188_p4 = pnand %p6186_p3, %p6183_p2 }
  0x31   :  { %6191 = shalt.err (!%p6188_p4)
}
  0x32   :  { %s6192_s5 = scalar_lea.vmem %s97_s2, 64  ;;  %p6197_p6 = scmp.lt.s32.totalorder %s97_s2, %s97_s2 }
  0x33   :  { %p6193_p5 = scmp.ne.s32.totalorder %s97_s2, %s6192_s5  ;;  %p6198_p7 = scmp.lt.s32.totalorder %s6192_s5, %s6192_s5 }
  0x35   :  { %p6199_p8 = por %p6198_p7, %p6197_p6 }
  0x37   :  { %p6200_p9 = pnand %p6199_p8, %p6193_p5 }
  0x39   :  { %6203 = shalt.err (!%p6200_p9)
}
  0x3a   :  { %99 = dma.hbm_to_vmem [thread:$0]  %s6971_s7, 64, %s97_s2, [#allocation12]  }
  0x3b   :  { %s6204_s28 = scalar_lea.hbm %s6973_s9, 64 }
  0x3c   :  { %p6205_p10 = scmp.ne.s32.totalorder %s6973_s9, %s6204_s28  ;;  %p6208_p11 = scmp.lt.u32.totalorder %s6204_s28, %s6973_s9 }
  0x3e   :  { %p6210_p12 = pnand %p6208_p11, %p6205_p10 }
  0x40   :  { %6213 = shalt.err (!%p6210_p12)
}
  0x41   :  { %s6214_s27 = scalar_lea.vmem %s119_s24, 64  ;;  %p6219_p0 = scmp.lt.s32.totalorder %s119_s24, %s119_s24 }
  0x42   :  { %p6215_p13 = scmp.ne.s32.totalorder %s119_s24, %s6214_s27  ;;  %p6220_p1 = scmp.lt.s32.totalorder %s6214_s27, %s6214_s27 }
  0x44   :  { %p6221_p2 = por %p6220_p1, %p6219_p0 }
  0x46   :  { %p6222_p3 = pnand %p6221_p2, %p6215_p13 }
  0x48   :  { %6225 = shalt.err (!%p6222_p3)
}
  0x49   :  { %121 = dma.hbm_to_vmem [thread:$0]  %s6973_s9, 64, %s119_s24, [#allocation15]  }
  0x4a   :  { %s6420_s29 = smov [#allocation17]   ;;  %s6421_s19 = smov [#allocation2]  }
  0x4b   :  { %s140_s0 = sshll.u32 %s6420_s29, 4  ;;  %s39_s1 = sshll.u32 %s6421_s19, 4  ;;  %s141_s0 = int_to_ptr.vmem [resolvable:$true] %s140_s0  ;;  %s6580_s1 = int_to_ptr.vmem [resolvable:$true] %s39_s1 }
  0x4c   :  { %s6226_s20 = scalar_lea.hbm %s6975_s11, 32 }
  0x4d   :  { %p6227_p4 = scmp.ne.s32.totalorder %s6975_s11, %s6226_s20  ;;  %p6230_p5 = scmp.lt.u32.totalorder %s6226_s20, %s6975_s11 }
  0x4f   :  { %p6232_p6 = pnand %p6230_p5, %p6227_p4 }
  0x51   :  { %6235 = shalt.err (!%p6232_p6)
}
  0x52   :  { %s6236_s9 = scalar_lea.vmem %s141_s0, 32  ;;  %p6241_p8 = scmp.lt.s32.totalorder %s141_s0, %s141_s0 }
  0x53   :  { %p6237_p7 = scmp.ne.s32.totalorder %s141_s0, %s6236_s9  ;;  %p6242_p9 = scmp.lt.s32.totalorder %s6236_s9, %s6236_s9 }
  0x55   :  { %p6243_p10 = por %p6242_p9, %p6241_p8 }
  0x57   :  { %p6244_p11 = pnand %p6243_p10, %p6237_p7 }
  0x59   :  { %6247 = shalt.err (!%p6244_p11)
}
  0x5a   :  { %143 = dma.hbm_to_vmem [thread:$0]  %s6975_s11, 32, %s141_s0, [#allocation18]  }
  0x5b   :  { %s6988_s27 = sld [smem:[#allocation30_spill]] }
  0x61   :  { %s6248_s7 = scalar_lea.hbm %s6988_s27, 1024 }
  0x62   :  { %p6249_p12 = scmp.ne.s32.totalorder %s6988_s27, %s6248_s7  ;;  %p6252_p13 = scmp.lt.u32.totalorder %s6248_s7, %s6988_s27 }
  0x64   :  { %p6254_p0 = pnand %p6252_p13, %p6249_p12 }
  0x66   :  { %6257 = shalt.err (!%p6254_p0)
}
  0x67   :  { %s6258_s30 = scalar_lea.vmem %s6580_s1, 1024  ;;  %p6263_p2 = scmp.lt.s32.totalorder %s6580_s1, %s6580_s1 }
  0x68   :  { %p6259_p1 = scmp.ne.s32.totalorder %s6580_s1, %s6258_s30  ;;  %p6264_p3 = scmp.lt.s32.totalorder %s6258_s30, %s6258_s30 }
  0x6a   :  { %p6265_p4 = por %p6264_p3, %p6263_p2 }
  0x6c   :  { %p6266_p5 = pnand %p6265_p4, %p6259_p1 }
  0x6e   :  { %6269 = shalt.err (!%p6266_p5)
}
  0x6f   :  { %s6422_s11 = smov 256   ;;  %s6423_s0 = smov 16  }
  0x70   :  { %45 = dma.hbm_to_vmem [thread:$0]  %s6988_s27, 1024, %s6580_s1, [#allocation3], %s6422_s11, %s6422_s11, %s6423_s0  }
  0x71   :  { %s6424_s3 = smov [#allocation7]   ;;  %s6425_s22 = smov [#allocation10]  }
  0x72   :  { %s61_s28 = sshll.u32 %s6424_s3, 4  ;;  %s83_s9 = sshll.u32 %s6425_s22, 4  ;;  %s62_s28 = int_to_ptr.vmem [resolvable:$true] %s61_s28  ;;  %s6614_s9 = int_to_ptr.vmem [resolvable:$true] %s83_s9 }
  0x73   :  { %s6270_s25 = scalar_lea.hbm %s6968_s4, 16384 }
  0x74   :  { %p6271_p6 = scmp.ne.s32.totalorder %s6968_s4, %s6270_s25  ;;  %p6274_p7 = scmp.lt.u32.totalorder %s6270_s25, %s6968_s4 }
  0x76   :  { %p6276_p8 = pnand %p6274_p7, %p6271_p6 }
  0x78   :  { %6279 = shalt.err (!%p6276_p8)
}
  0x79   :  { %s6280_s1 = scalar_lea.vmem %s62_s28, 16384  ;;  %p6285_p10 = scmp.lt.s32.totalorder %s62_s28, %s62_s28 }
  0x7a   :  { %p6281_p9 = scmp.ne.s32.totalorder %s62_s28, %s6280_s1  ;;  %p6286_p11 = scmp.lt.s32.totalorder %s6280_s1, %s6280_s1 }
  0x7c   :  { %p6287_p12 = por %p6286_p11, %p6285_p10 }
  0x7e   :  { %p6288_p13 = pnand %p6287_p12, %p6281_p9 }
  0x80   :  { %6291 = shalt.err (!%p6288_p13)
}
  0x81   :  { %67 = dma.hbm_to_vmem [thread:$0]  %s6968_s4, 16384, %s62_s28, [#allocation6], %s6422_s11, %s6422_s11, %s6423_s0  }
  0x82   :  { %s6292_s20 = scalar_lea.hbm %s6970_s6, 16384 }
  0x83   :  { %p6293_p0 = scmp.ne.s32.totalorder %s6970_s6, %s6292_s20  ;;  %p6296_p1 = scmp.lt.u32.totalorder %s6292_s20, %s6970_s6 }
  0x85   :  { %p6298_p2 = pnand %p6296_p1, %p6293_p0 }
  0x87   :  { %6301 = shalt.err (!%p6298_p2)
}
  0x88   :  { %s6302_s23 = scalar_lea.vmem %s6614_s9, 16384  ;;  %p6307_p4 = scmp.lt.s32.totalorder %s6614_s9, %s6614_s9 }
  0x89   :  { %p6303_p3 = scmp.ne.s32.totalorder %s6614_s9, %s6302_s23  ;;  %p6308_p5 = scmp.lt.s32.totalorder %s6302_s23, %s6302_s23 }
  0x8b   :  { %p6309_p6 = por %p6308_p5, %p6307_p4 }
  0x8d   :  { %p6310_p7 = pnand %p6309_p6, %p6303_p3 }
  0x8f   :  { %6313 = shalt.err (!%p6310_p7)
}
  0x90   :  { %89 = dma.hbm_to_vmem [thread:$0]  %s6970_s6, 16384, %s6614_s9, [#allocation9], %s6422_s11, %s6422_s11, %s6423_s0  }
  0x91   :  { %s6426_s25 = smov [#allocation13]   ;;  %s6427_s7 = smov [#allocation16]  }
  0x92   :  { %s105_s26 = sshll.u32 %s6426_s25, 4  ;;  %s127_s2 = sshll.u32 %s6427_s7, 4  ;;  %s106_s26 = int_to_ptr.vmem [resolvable:$true] %s105_s26  ;;  %s6651_s2 = int_to_ptr.vmem [resolvable:$true] %s127_s2 }
  0x93   :  { %s6314_s27 = scalar_lea.hbm %s6972_s8, 16384 }
  0x94   :  { %p6315_p8 = scmp.ne.s32.totalorder %s6972_s8, %s6314_s27  ;;  %p6318_p9 = scmp.lt.u32.totalorder %s6314_s27, %s6972_s8 }
  0x96   :  { %p6320_p10 = pnand %p6318_p9, %p6315_p8 }
  0x98   :  { %6323 = shalt.err (!%p6320_p10)
}
  0x99   :  { %s6324_s6 = scalar_lea.vmem %s106_s26, 16384  ;;  %p6329_p12 = scmp.lt.s32.totalorder %s106_s26, %s106_s26 }
  0x9a   :  { %p6325_p11 = scmp.ne.s32.totalorder %s106_s26, %s6324_s6  ;;  %p6330_p13 = scmp.lt.s32.totalorder %s6324_s6, %s6324_s6 }
  0x9c   :  { %p6331_p0 = por %p6330_p13, %p6329_p12 }
  0x9e   :  { %p6332_p1 = pnand %p6331_p0, %p6325_p11 }
  0xa0   :  { %6335 = shalt.err (!%p6332_p1)
}
  0xa1   :  { %111 = dma.hbm_to_vmem [thread:$0]  %s6972_s8, 16384, %s106_s26, [#allocation12], %s6422_s11, %s6422_s11, %s6423_s0  }
  0xa2   :  { %s6336_s24 = scalar_lea.hbm %s6974_s10, 8192 }
  0xa3   :  { %p6337_p2 = scmp.ne.s32.totalorder %s6974_s10, %s6336_s24  ;;  %p6340_p3 = scmp.lt.u32.totalorder %s6336_s24, %s6974_s10 }
  0xa5   :  { %p6342_p4 = pnand %p6340_p3, %p6337_p2 }
  0xa7   :  { %6345 = shalt.err (!%p6342_p4)
}
  0xa8   :  { %s6346_s7 = scalar_lea.vmem %s6651_s2, 8192  ;;  %p6351_p6 = scmp.lt.s32.totalorder %s6651_s2, %s6651_s2 }
  0xa9   :  { %p6347_p5 = scmp.ne.s32.totalorder %s6651_s2, %s6346_s7  ;;  %p6352_p7 = scmp.lt.s32.totalorder %s6346_s7, %s6346_s7 }
  0xab   :  { %p6353_p8 = por %p6352_p7, %p6351_p6 }
  0xad   :  { %p6354_p9 = pnand %p6353_p8, %p6347_p5 }
  0xaf   :  { %6357 = shalt.err (!%p6354_p9)
}
  0xb0   :  { %s6428_s8 = smov 128   ;;  %s6429_s11 = smov 8  }
  0xb1   :  { %133 = dma.hbm_to_vmem [thread:$0]  %s6974_s10, 8192, %s6651_s2, [#allocation15], %s6428_s8, %s6428_s8, %s6429_s11  }
  0xb2   :  { %s6430_s29 = smov [#allocation19]   ;;  %s6358_s5 = scalar_lea.hbm %s6978_s14, 1024 }
  0xb3   :  { %s153_s1 = sshll.u32 %s6430_s29, 4  ;;  %p6359_p10 = scmp.ne.s32.totalorder %s6978_s14, %s6358_s5  ;;  %s154_s1 = int_to_ptr.vmem [resolvable:$true] %s153_s1 }
  0xb4   :  { %p6362_p11 = scmp.lt.u32.totalorder %s6358_s5, %s6978_s14 }
  0xb6   :  { %p6364_p12 = pnand %p6362_p11, %p6359_p10 }
  0xb8   :  { %6367 = shalt.err (!%p6364_p12)
}
  0xb9   :  { %s6368_s21 = scalar_lea.vmem %s154_s1, 1024  ;;  %p6373_p0 = scmp.lt.s32.totalorder %s154_s1, %s154_s1 }
  0xba   :  { %p6369_p13 = scmp.ne.s32.totalorder %s154_s1, %s6368_s21  ;;  %p6374_p1 = scmp.lt.s32.totalorder %s6368_s21, %s6368_s21 }
  0xbc   :  { %p6375_p2 = por %p6374_p1, %p6373_p0 }
  0xbe   :  { %p6376_p3 = pnand %p6375_p2, %p6369_p13 }
  0xc0   :  { %6379 = shalt.err (!%p6376_p3)
}
  0xc1   :  { %s6431_s10 = smov 64   ;;  %s6432_s2 = smov 4  }
  0xc2   :  { %159 = dma.hbm_to_vmem [thread:$0]  %s6978_s14, 1024, %s154_s1, [#allocation18], %s6431_s10, %s6431_s10, %s6432_s2  }
  0xc3   :  { %6402 = dma.done.wait [#allocation3], 1024  }
  0xc4   :  { %6403 = vsyncadd [#allocation3], 4294966272 }
  0xc5   :  { %6404 = dma.done.wait [#allocation6], 16448  }
  0xc6   :  { %6405 = vsyncadd [#allocation6], 4294950848 }
  0xc7   :  { %6406 = dma.done.wait [#allocation9], 16448  }
  0xc8   :  { %6407 = vsyncadd [#allocation9], 4294950848 }
  0xc9   :  { %6408 = dma.done.wait [#allocation12], 16448  }
  0xca   :  { %6409 = vsyncadd [#allocation12], 4294950848 }
  0xcb   :  { %6410 = dma.done.wait [#allocation15], 8256  }
  0xcc   :  { %6411 = vsyncadd [#allocation15], 4294959040 }
  0xcd   :  { %6412 = dma.done.wait [#allocation18], 1056  }
  0xce   :  { %6413 = vsyncadd [#allocation18], 4294966240  ;;  %v6433_v0 = vmov 0   ;;  %v5416_v1 = vld [vmem:[#allocation2 + $0x4] ss:$16 sps:$4 sm:$0xff]   ;;  %s6989_s23 = sld [smem:[#allocation28_spill]] }
  0xcf   :  { %288 = vmatprep.mubr.bf16.mxu0 %v6433_v0  ;;  %329 = vmatprep.mubr.bf16.mxu1 %v6433_v0  ;;  %v5418_v2 = vld [vmem:[#allocation2] ss:$16 sps:$4 sm:$0xff]   ;;  %v5419_v3 = vld [vmem:[#allocation2 + $0x24] ss:$16 sps:$4 sm:$0xff]   ;;  %v5422_v6 = vld [vmem:[#allocation2 + $0xc] ss:$16 sps:$4 sm:$0xff]  }
  0xd0   :  { %256 = vmatprep.subr.bf16.mxu0 %v5416_v1  ;;  %v5421_v4 = vld [vmem:[#allocation2 + $0x20] ss:$16 sps:$4 sm:$0xff]   ;;  %v5424_v7 = vld [vmem:[#allocation2 + $0x8] ss:$16 sps:$4 sm:$0xff]   ;;  %297 = vmatprep.subr.bf16.mxu1 %v5422_v6  ;;  %v5425_v8 = vld [vmem:[#allocation2 + $0x2c] ss:$16 sps:$4 sm:$0xff]  }
  0xd1   :  { %257 = vmatpush1.bf16.msra.mxu0 %v5418_v2  ;;  %v5427_v9 = vld [vmem:[#allocation2 + $0x28] ss:$16 sps:$4 sm:$0xff]   ;;  %298 = vmatpush1.bf16.msra.mxu1 %v5424_v7  ;;  %vm252_vm0 = vcmask 261120   ;;  %vm367_vm1 = vcmask 1043456   ;;  %s6990_s25 = sld [smem:[#allocation29_spill]]  ;;  %vm363_vm2 = vcmask 64512  }
  0xd2   :  { %258 = vmatprep.subr.bf16.mxu0 %v5419_v3  ;;  %299 = vmatprep.subr.bf16.mxu1 %v5425_v8  ;;  %v5430_v16 = vld [vmem:[#allocation7 + $0x4] ss:$16 sps:$4 sm:$0xff]   ;;  %v5428_v25 = vld [vmem:[#allocation7] ss:$16 sps:$4 sm:$0xff]   ;;  %v5433_v26 = vld [vmem:[#allocation7 + $0xc] ss:$16 sps:$4 sm:$0xff]  }
  0xd3   :  { %v5436_v29 = vld [vmem:[#allocation7 + $0x24] ss:$16 sps:$4 sm:$0xff]   ;;  %v5431_v30 = vld [vmem:[#allocation7 + $0x8] ss:$16 sps:$4 sm:$0xff]   ;;  %v5434_v31 = vld [vmem:[#allocation7 + $0x20] ss:$16 sps:$4 sm:$0xff]  }
  0xd4   :  { %v201_v5 = vld [vmem:[%s6989_s23] sm:$0xff]  ;;  %v5442_v33 = vld [vmem:[#allocation7 + $0x44] ss:$16 sps:$4 sm:$0xff]   ;;  %v5437_v34 = vld [vmem:[#allocation7 + $0x28] ss:$16 sps:$4 sm:$0xff]   ;;  %vm6435_vm3 = vmmov 0  }
  0xd5   :  { %v211_v10 = vpack.c.bf16 %v201_v5, %v201_v5  ;;  %259 = vmatpush1.bf16.msra.mxu0 %v5421_v4  ;;  %300 = vmatpush1.bf16.msra.mxu1 %v5427_v9  ;;  %v5439_v32 = vld [vmem:[#allocation7 + $0x2c] ss:$16 sps:$4 sm:$0xff]   ;;  %v5440_v35 = vld [vmem:[#allocation7 + $0x40] ss:$16 sps:$4 sm:$0xff]   ;;  %v5448_v37 = vld [vmem:[#allocation7 + $0x64] ss:$16 sps:$4 sm:$0xff]  }
  0xd6   :  { %v5445_v36 = vld [vmem:[#allocation7 + $0x4c] ss:$16 sps:$4 sm:$0xff]   ;;  %v5443_v38 = vld [vmem:[#allocation7 + $0x48] ss:$16 sps:$4 sm:$0xff]   ;;  %v5446_v39 = vld [vmem:[#allocation7 + $0x60] ss:$16 sps:$4 sm:$0xff]  }
  0xd7   :  { %v6709_v20 = vld [vmem:[%s6990_s25] sm:$0xf]  ;;  %v5454_v41 = vld [vmem:[#allocation7 + $0x84] ss:$16 sps:$4 sm:$0xff]   ;;  %v5449_v42 = vld [vmem:[#allocation7 + $0x68] ss:$16 sps:$4 sm:$0xff]  }
  0xd8   :  { %4757 = vmatmul.mubr.msk.bf16.vlgmr.msra.gmra.mrb[0].mxu0 %vm252_vm0, %v211_v10  ;;  %4758 = vmatmul.mubr.msk.bf16.vlgmr.msra.gmra.mrb[0].mxu1 %vm252_vm0, %v211_v10  ;;  %v5451_v40 = vld [vmem:[#allocation7 + $0x6c] ss:$16 sps:$4 sm:$0xff]   ;;  %v5452_v43 = vld [vmem:[#allocation7 + $0x80] ss:$16 sps:$4 sm:$0xff]   ;;  %v5460_v45 = vld [vmem:[#allocation7 + $0xa4] ss:$16 sps:$4 sm:$0xff]  }
  0xd9   :  { %412 = vmatprep.mubr.bf16.mxu0 %v6433_v0  ;;  %453 = vmatprep.mubr.bf16.mxu1 %v6433_v0  ;;  %v5457_v44 = vld [vmem:[#allocation7 + $0x8c] ss:$16 sps:$4 sm:$0xff]   ;;  %v5455_v46 = vld [vmem:[#allocation7 + $0x88] ss:$16 sps:$4 sm:$0xff]   ;;  %v5458_v47 = vld [vmem:[#allocation7 + $0xa0] ss:$16 sps:$4 sm:$0xff]  }
  0xda   :  { %v5463_v48 = vld [vmem:[#allocation7 + $0xac] ss:$16 sps:$4 sm:$0xff]   ;;  %v5466_v49 = vld [vmem:[#allocation7 + $0xc4] ss:$16 sps:$4 sm:$0xff]   ;;  %v5461_v50 = vld [vmem:[#allocation7 + $0xa8] ss:$16 sps:$4 sm:$0xff]  }
  0xdb   :  { %v5464_v51 = vld [vmem:[#allocation7 + $0xc0] ss:$16 sps:$4 sm:$0xff]   ;;  %v5469_v52 = vld [vmem:[#allocation7 + $0xcc] ss:$16 sps:$4 sm:$0xff]   ;;  %v5472_v53 = vld [vmem:[#allocation7 + $0xe4] ss:$16 sps:$4 sm:$0xff]  }
  0xdc   :  { %v5467_v54 = vld [vmem:[#allocation7 + $0xc8] ss:$16 sps:$4 sm:$0xff]   ;;  %v5470_v55 = vld [vmem:[#allocation7 + $0xe0] ss:$16 sps:$4 sm:$0xff]   ;;  %v5475_v56 = vld [vmem:[#allocation7 + $0xec] ss:$16 sps:$4 sm:$0xff]  }
  0xdd   :  { %v5478_v57 = vld [vmem:[#allocation7 + $0x104] ss:$16 sps:$4 sm:$0xff]   ;;  %v5473_v58 = vld [vmem:[#allocation7 + $0xe8] ss:$16 sps:$4 sm:$0xff]   ;;  %v5476_v59 = vld [vmem:[#allocation7 + $0x100] ss:$16 sps:$4 sm:$0xff]  }
  0xde   :  { %v5481_v60 = vld [vmem:[#allocation7 + $0x10c] ss:$16 sps:$4 sm:$0xff]   ;;  %v5484_v61 = vld [vmem:[#allocation7 + $0x124] ss:$16 sps:$4 sm:$0xff]   ;;  %v5479_v62 = vld [vmem:[#allocation7 + $0x108] ss:$16 sps:$4 sm:$0xff]  }
  0xdf   :  { %v5482_v63 = vld [vmem:[#allocation7 + $0x120] ss:$16 sps:$4 sm:$0xff]   ;;  %v5487_v1 = vld [vmem:[#allocation7 + $0x12c] ss:$16 sps:$4 sm:$0xff]   ;;  %v5490_v2 = vld [vmem:[#allocation7 + $0x144] ss:$16 sps:$4 sm:$0xff]  }
  0xe0   :  { %v5485_v3 = vld [vmem:[#allocation7 + $0x128] ss:$16 sps:$4 sm:$0xff]   ;;  %v5488_v4 = vld [vmem:[#allocation7 + $0x140] ss:$16 sps:$4 sm:$0xff]   ;;  %v5493_v5 = vld [vmem:[#allocation7 + $0x14c] ss:$16 sps:$4 sm:$0xff]  }
  0xe1   :  { %v5496_v6 = vld [vmem:[#allocation7 + $0x164] ss:$16 sps:$4 sm:$0xff]   ;;  %v5491_v7 = vld [vmem:[#allocation7 + $0x148] ss:$16 sps:$4 sm:$0xff]   ;;  %v5494_v8 = vld [vmem:[#allocation7 + $0x160] ss:$16 sps:$4 sm:$0xff]  }
  0xe2   :  { %v5499_v9 = vld [vmem:[#allocation7 + $0x16c] ss:$16 sps:$4 sm:$0xff]   ;;  %v5502_v10 = vld [vmem:[#allocation7 + $0x184] ss:$16 sps:$4 sm:$0xff]   ;;  %vm4715_vm4 = vcmask 523264  }
 0x1ab   :  { %v290_v11 = vpop.f32.mrb[0].mxu0  ;;  %v331_v19 = vpop.f32.mrb[0].mxu1 }
 0x1ac   :  { %v338_v12 = vpack.c.bf16 %v290_v11, %v290_v11  ;;  %v292_v13 = vpop.f32.mrb[1].mxu0  ;;  %v340_v21 = vpack.c.bf16 %v331_v19, %v331_v19  ;;  %v333_v22 = vpop.f32.mrb[1].mxu1  ;;  %v5497_v11 = vld [vmem:[#allocation7 + $0x168] ss:$16 sps:$4 sm:$0xff]   ;;  %v5514_v19 = vld [vmem:[#allocation7 + $0x1c4] ss:$16 sps:$4 sm:$0xff]  }
 0x1ad   :  { %v339_v14 = vpack.c.bf16 %v292_v13, %v292_v13  ;;  %v294_v15 = vpop.f32.mrb[2].mxu0  ;;  %v341_v23 = vpack.c.bf16 %v333_v22, %v333_v22  ;;  %v335_v24 = vpop.f32.mrb[2].mxu1  ;;  %v5505_v13 = vld [vmem:[#allocation7 + $0x18c] ss:$16 sps:$4 sm:$0xff]   ;;  %v5512_v22 = vld [vmem:[#allocation7 + $0x1c0] ss:$16 sps:$4 sm:$0xff]  }
 0x1ae   :  { %v369_v17 = vsel %vm367_vm1, %v338_v12, 0  ;;  %v295_v18 = vpop.f32.mrb[3].mxu0  ;;  %v375_v27 = vsel %vm367_vm1, %v340_v21, 0  ;;  %v336_v28 = vpop.f32.mrb[3].mxu1  ;;  %v5500_v12 = vld [vmem:[#allocation7 + $0x180] ss:$16 sps:$4 sm:$0xff]  }
 0x1af   :  { %4759 = vmatprep.subr.msk.bf16.mxu0 %vm367_vm1, %v339_v14  ;;  %4761 = vmatprep.subr.msk.bf16.mxu1 %vm367_vm1, %v341_v23  ;;  %v5508_v14 = vld [vmem:[#allocation7 + $0x1a4] ss:$16 sps:$4 sm:$0xff]   ;;  %v5503_v15 = vld [vmem:[#allocation7 + $0x188] ss:$16 sps:$4 sm:$0xff]   ;;  %v5517_v21 = vld [vmem:[#allocation7 + $0x1cc] ss:$16 sps:$4 sm:$0xff]  }
 0x1b0   :  { %381 = vmatpush1.bf16.msra.mxu0 %v369_v17  ;;  %422 = vmatpush1.bf16.msra.mxu1 %v375_v27  ;;  %v5511_v17 = vld [vmem:[#allocation7 + $0x1ac] ss:$16 sps:$4 sm:$0xff]   ;;  %v5509_v18 = vld [vmem:[#allocation7 + $0x1a8] ss:$16 sps:$4 sm:$0xff]   ;;  %v5520_v24 = vld [vmem:[#allocation7 + $0x1e4] ss:$16 sps:$4 sm:$0xff]  }
 0x1b1   :  { %1239 = vmatprep.subr.bf16.mxu0 %v5430_v16  ;;  %1321 = vmatprep.subr.bf16.mxu1 %v5433_v26  ;;  %v5506_v16 = vld [vmem:[#allocation7 + $0x1a0] ss:$16 sps:$4 sm:$0xff]   ;;  %v5515_v23 = vld [vmem:[#allocation7 + $0x1c8] ss:$16 sps:$4 sm:$0xff]   ;;  %v5526_v28 = vld [vmem:[#allocation7 + $0x204] ss:$16 sps:$4 sm:$0xff]  }
 0x1b2   :  { %v5518_v26 = vld [vmem:[#allocation7 + $0x1e0] ss:$16 sps:$4 sm:$0xff]   ;;  %v5521_v27 = vld [vmem:[#allocation7 + $0x1e8] ss:$16 sps:$4 sm:$0xff]  }
 0x1b3   :  { %4760 = vmatmul.mubr.msk.bf16.vlgmr.msra.gmra.mrb[4].mxu0 %vm363_vm2, %v6709_v20  ;;  %4762 = vmatmul.mubr.msk.bf16.vlgmr.msra.gmra.mrb[4].mxu1 %vm363_vm2, %v6709_v20 }
 0x1b4   :  { %1240 = vmatpush1.bf16.msra.mxu0 %v5428_v25  ;;  %1322 = vmatpush1.bf16.msra.mxu1 %v5431_v30  ;;  %v5523_v25 = vld [vmem:[#allocation7 + $0x1ec] ss:$16 sps:$4 sm:$0xff]   ;;  %v343_v30 = vlaneseq }
 0x1b5   :  { %1241 = vmatprep.subr.bf16.mxu0 %v5436_v29  ;;  %1323 = vmatprep.subr.bf16.mxu1 %v5439_v32  ;;  %v5529_v29 = vld [vmem:[#allocation7 + $0x20c] ss:$16 sps:$4 sm:$0xff]  }
 0x1b8   :  { %1242 = vmatpush1.bf16.msra.mxu0 %v5434_v31  ;;  %1324 = vmatpush1.bf16.msra.mxu1 %v5437_v34  ;;  %v6717_v31 = vshrl.u32 %v343_v30, 7  ;;  %v5578_v30 = vld [vmem:[#allocation7 + $0x320] ss:$16 sps:$4 sm:$0xff]  }
 0x1b9   :  { %1243 = vmatprep.subr.bf16.mxu0 %v5442_v33  ;;  %1325 = vmatprep.subr.bf16.mxu1 %v5445_v36  ;;  %v6722_v33 = vld [vmem:[#allocation5] sm:$0xf] }
 0x1ba   :  { %v6720_v32 = vsub.s32 0, %v6717_v31  ;;  %v6725_v34 = vsub.s32 1, %v6717_v31  ;;  %v6730_v36 = vsub.s32 3, %v6717_v31 }
 0x1bc   :  { %1244 = vmatpush1.bf16.msra.mxu0 %v5440_v35  ;;  %1326 = vmatpush1.bf16.msra.mxu1 %v5443_v38  ;;  %v346_v35 = vrot.slane %v6722_v33, %v6720_v32 }
 0x1bd   :  { %1245 = vmatprep.subr.bf16.mxu0 %v5448_v37  ;;  %1327 = vmatprep.subr.bf16.mxu1 %v5451_v40  ;;  %v350_v37 = vrot.slane %v6722_v33, %v6725_v34 }
 0x1c0   :  { %1246 = vmatpush1.bf16.msra.mxu0 %v5446_v39  ;;  %1328 = vmatpush1.bf16.msra.mxu1 %v5449_v42 }
 0x1c1   :  { %1247 = vmatprep.subr.bf16.mxu0 %v5454_v41  ;;  %1329 = vmatprep.subr.bf16.mxu1 %v5457_v44  ;;  %v358_v41 = vrot.slane %v6722_v33, %v6730_v36 }
 0x1c4   :  { %1248 = vmatpush1.bf16.msra.mxu0 %v5452_v43  ;;  %1330 = vmatpush1.bf16.msra.mxu1 %v5455_v46 }
 0x1c5   :  { %1249 = vmatprep.subr.bf16.mxu0 %v5460_v45  ;;  %1331 = vmatprep.subr.bf16.mxu1 %v5463_v48 }
 0x1c8   :  { %1250 = vmatpush1.bf16.msra.mxu0 %v5458_v47  ;;  %1332 = vmatpush1.bf16.msra.mxu1 %v5461_v50 }
 0x1c9   :  { %1251 = vmatprep.subr.bf16.mxu0 %v5466_v49  ;;  %1333 = vmatprep.subr.bf16.mxu1 %v5469_v52  ;;  %v5524_v52 = vld [vmem:[#allocation7 + $0x200] ss:$16 sps:$4 sm:$0xff]  }
 0x1cc   :  { %1252 = vmatpush1.bf16.msra.mxu0 %v5464_v51  ;;  %1334 = vmatpush1.bf16.msra.mxu1 %v5467_v54 }
 0x1cd   :  { %1253 = vmatprep.subr.bf16.mxu0 %v5472_v53  ;;  %1335 = vmatprep.subr.bf16.mxu1 %v5475_v56  ;;  %v5527_v53 = vld [vmem:[#allocation7 + $0x208] ss:$16 sps:$4 sm:$0xff]   ;;  %v5532_v56 = vld [vmem:[#allocation7 + $0x224] ss:$16 sps:$4 sm:$0xff]  }
 0x1d0   :  { %1254 = vmatpush1.bf16.msra.mxu0 %v5470_v55  ;;  %1336 = vmatpush1.bf16.msra.mxu1 %v5473_v58 }
 0x1d1   :  { %1255 = vmatprep.subr.bf16.mxu0 %v5478_v57  ;;  %1337 = vmatprep.subr.bf16.mxu1 %v5481_v60  ;;  %v5535_v57 = vld [vmem:[#allocation7 + $0x22c] ss:$16 sps:$4 sm:$0xff]   ;;  %v5530_v60 = vld [vmem:[#allocation7 + $0x220] ss:$16 sps:$4 sm:$0xff]  }
 0x1d4   :  { %1256 = vmatpush1.bf16.msra.mxu0 %v5476_v59  ;;  %1338 = vmatpush1.bf16.msra.mxu1 %v5479_v62  ;;  %v5538_v62 = vld [vmem:[#allocation7 + $0x244] ss:$16 sps:$4 sm:$0xff]  }
 0x1d5   :  { %1257 = vmatprep.subr.bf16.mxu0 %v5484_v61  ;;  %1339 = vmatprep.subr.bf16.mxu1 %v5487_v1  ;;  %v5533_v61 = vld [vmem:[#allocation7 + $0x228] ss:$16 sps:$4 sm:$0xff]   ;;  %v5536_v1 = vld [vmem:[#allocation7 + $0x240] ss:$16 sps:$4 sm:$0xff]  }
 0x1d8   :  { %1258 = vmatpush1.bf16.msra.mxu0 %v5482_v63  ;;  %1340 = vmatpush1.bf16.msra.mxu1 %v5485_v3  ;;  %v5541_v63 = vld [vmem:[#allocation7 + $0x24c] ss:$16 sps:$4 sm:$0xff]   ;;  %v5544_v3 = vld [vmem:[#allocation7 + $0x264] ss:$16 sps:$4 sm:$0xff]  }
 0x1d9   :  { %1259 = vmatprep.subr.bf16.mxu0 %v5490_v2  ;;  %1341 = vmatprep.subr.bf16.mxu1 %v5493_v5  ;;  %v5539_v2 = vld [vmem:[#allocation7 + $0x248] ss:$16 sps:$4 sm:$0xff]   ;;  %v5542_v5 = vld [vmem:[#allocation7 + $0x260] ss:$16 sps:$4 sm:$0xff]  }
 0x1dc   :  { %1260 = vmatpush1.bf16.msra.mxu0 %v5488_v4  ;;  %1342 = vmatpush1.bf16.msra.mxu1 %v5491_v7  ;;  %v5547_v4 = vld [vmem:[#allocation7 + $0x26c] ss:$16 sps:$4 sm:$0xff]   ;;  %v5550_v7 = vld [vmem:[#allocation7 + $0x284] ss:$16 sps:$4 sm:$0xff]  }
 0x1dd   :  { %1261 = vmatprep.subr.bf16.mxu0 %v5496_v6  ;;  %1343 = vmatprep.subr.bf16.mxu1 %v5499_v9  ;;  %v5545_v6 = vld [vmem:[#allocation7 + $0x268] ss:$16 sps:$4 sm:$0xff]   ;;  %v5548_v9 = vld [vmem:[#allocation7 + $0x280] ss:$16 sps:$4 sm:$0xff]  }
 0x1e0   :  { %1262 = vmatpush1.bf16.msra.mxu0 %v5494_v8  ;;  %1344 = vmatpush1.bf16.msra.mxu1 %v5497_v11  ;;  %v5553_v8 = vld [vmem:[#allocation7 + $0x28c] ss:$16 sps:$4 sm:$0xff]   ;;  %v5556_v11 = vld [vmem:[#allocation7 + $0x2a4] ss:$16 sps:$4 sm:$0xff]  }
 0x1e1   :  { %1263 = vmatprep.subr.bf16.mxu0 %v5502_v10  ;;  %1345 = vmatprep.subr.bf16.mxu1 %v5505_v13  ;;  %v5551_v10 = vld [vmem:[#allocation7 + $0x288] ss:$16 sps:$4 sm:$0xff]   ;;  %v5554_v13 = vld [vmem:[#allocation7 + $0x2a0] ss:$16 sps:$4 sm:$0xff]  }
 0x1e4   :  { %1264 = vmatpush1.bf16.msra.mxu0 %v5500_v12  ;;  %1346 = vmatpush1.bf16.msra.mxu1 %v5503_v15  ;;  %v5559_v12 = vld [vmem:[#allocation7 + $0x2ac] ss:$16 sps:$4 sm:$0xff]   ;;  %v5562_v15 = vld [vmem:[#allocation7 + $0x2c4] ss:$16 sps:$4 sm:$0xff]  }
 0x1e5   :  { %1265 = vmatprep.subr.bf16.mxu0 %v5508_v14  ;;  %1347 = vmatprep.subr.bf16.mxu1 %v5511_v17  ;;  %v5557_v14 = vld [vmem:[#allocation7 + $0x2a8] ss:$16 sps:$4 sm:$0xff]   ;;  %v5560_v17 = vld [vmem:[#allocation7 + $0x2c0] ss:$16 sps:$4 sm:$0xff]  }
 0x1e8   :  { %1266 = vmatpush1.bf16.msra.mxu0 %v5506_v16  ;;  %1348 = vmatpush1.bf16.msra.mxu1 %v5509_v18  ;;  %v5565_v16 = vld [vmem:[#allocation7 + $0x2cc] ss:$16 sps:$4 sm:$0xff]   ;;  %v5563_v18 = vld [vmem:[#allocation7 + $0x2c8] ss:$16 sps:$4 sm:$0xff]  }
 0x1e9   :  { %1267 = vmatprep.subr.bf16.mxu0 %v5514_v19  ;;  %1349 = vmatprep.subr.bf16.mxu1 %v5517_v21  ;;  %v5568_v19 = vld [vmem:[#allocation7 + $0x2e4] ss:$16 sps:$4 sm:$0xff]   ;;  %v5571_v21 = vld [vmem:[#allocation7 + $0x2ec] ss:$16 sps:$4 sm:$0xff]  }
 0x1ec   :  { %1268 = vmatpush1.bf16.msra.mxu0 %v5512_v22  ;;  %1350 = vmatpush1.bf16.msra.mxu1 %v5515_v23  ;;  %v5566_v22 = vld [vmem:[#allocation7 + $0x2e0] ss:$16 sps:$4 sm:$0xff]   ;;  %v5569_v23 = vld [vmem:[#allocation7 + $0x2e8] ss:$16 sps:$4 sm:$0xff]  }
 0x1ed   :  { %1269 = vmatprep.subr.bf16.mxu0 %v5520_v24  ;;  %1351 = vmatprep.subr.bf16.mxu1 %v5523_v25  ;;  %v5574_v24 = vld [vmem:[#allocation7 + $0x304] ss:$16 sps:$4 sm:$0xff]   ;;  %v5577_v25 = vld [vmem:[#allocation7 + $0x30c] ss:$16 sps:$4 sm:$0xff]  }
 0x1f0   :  { %1270 = vmatpush1.bf16.msra.mxu0 %v5518_v26  ;;  %1352 = vmatpush1.bf16.msra.mxu1 %v5521_v27  ;;  %v5572_v26 = vld [vmem:[#allocation7 + $0x300] ss:$16 sps:$4 sm:$0xff]   ;;  %v5575_v27 = vld [vmem:[#allocation7 + $0x308] ss:$16 sps:$4 sm:$0xff]  }
 0x1f1   :  { %1280 = vmatprep.subr.bf16.mxu0 %v5526_v28  ;;  %1362 = vmatprep.subr.bf16.mxu1 %v5529_v29  ;;  %v5580_v28 = vld [vmem:[#allocation7 + $0x324] ss:$16 sps:$4 sm:$0xff]   ;;  %v5583_v29 = vld [vmem:[#allocation7 + $0x32c] ss:$16 sps:$4 sm:$0xff]  }
 0x286   :  { %v414_v38 = vpop.f32.mrb[4].mxu0  ;;  %v6736_v46 = vpop.f32.mrb[4].mxu1 }
 0x287   :  { %v415_v39 = vadd.f32 %v414_v38, %v346_v35  ;;  %v416_v40 = vpop.f32.mrb[5].mxu0  ;;  %v457_v48 = vpop.f32.mrb[5].mxu1  ;;  %v5581_v35 = vld [vmem:[#allocation7 + $0x328] ss:$16 sps:$4 sm:$0xff]   ;;  %v5589_v38 = vld [vmem:[#allocation7 + $0x34c] ss:$16 sps:$4 sm:$0xff]  }
 0x288   :  { %v417_v42 = vadd.f32 %v416_v40, %v350_v37  ;;  %v418_v43 = vpop.f32.mrb[6].mxu0  ;;  %v458_v49 = vadd.f32 %v457_v48, %v358_v41  ;;  %v459_v50 = vpop.f32.mrb[6].mxu1  ;;  %v5586_v37 = vld [vmem:[#allocation7 + $0x344] ss:$16 sps:$4 sm:$0xff]   ;;  %v5587_v40 = vld [vmem:[#allocation7 + $0x348] ss:$16 sps:$4 sm:$0xff]  }
 0x289   :  { %v462_v44 = vmax.f32 %v415_v39, 0.0  ;;  %v419_v45 = vpop.f32.mrb[7].mxu0  ;;  %v460_v54 = vpop.f32.mrb[7].mxu1  ;;  %v5584_v39 = vld [vmem:[#allocation7 + $0x340] ss:$16 sps:$4 sm:$0xff]   ;;  %v6739_v50 = vsub.s32 2, %v6717_v31 }
 0x28a   :  { %v463_v47 = vmax.f32 %v417_v42, 0.0  ;;  %v465_v58 = vmax.f32 %v458_v49, 0.0  ;;  %v5592_v41 = vld [vmem:[#allocation7 + $0x364] ss:$16 sps:$4 sm:$0xff]   ;;  %v5595_v42 = vld [vmem:[#allocation7 + $0x36c] ss:$16 sps:$4 sm:$0xff]  }
 0x28b   :  { %v595_v55 = vpack.c.bf16 %v462_v44, %v462_v44  ;;  %v5590_v43 = vld [vmem:[#allocation7 + $0x360] ss:$16 sps:$4 sm:$0xff]   ;;  %v5593_v44 = vld [vmem:[#allocation7 + $0x368] ss:$16 sps:$4 sm:$0xff]   ;;  %v5598_v45 = vld [vmem:[#allocation7 + $0x384] ss:$16 sps:$4 sm:$0xff]  }
 0x28c   :  { %v596_v51 = vpack.c.bf16 %v463_v47, %v463_v47  ;;  %v598_v59 = vpack.c.bf16 %v465_v58, %v465_v58  ;;  %v5601_v47 = vld [vmem:[#allocation7 + $0x38c] ss:$16 sps:$4 sm:$0xff]   ;;  %v5596_v48 = vld [vmem:[#allocation7 + $0x380] ss:$16 sps:$4 sm:$0xff]   ;;  %v5599_v49 = vld [vmem:[#allocation7 + $0x388] ss:$16 sps:$4 sm:$0xff]  }
 0x28d   :  { %v5605_v54 = vld [vmem:[#allocation7 + $0x3a8] ss:$16 sps:$4 sm:$0xff]   ;;  %v5608_v58 = vld [vmem:[#allocation7 + $0x3c0] ss:$16 sps:$4 sm:$0xff]  }
 0x28e   :  { %1271 = vmatprep.mubr.bf16.mxu0 %v596_v51  ;;  %1353 = vmatprep.mubr.bf16.mxu1 %v596_v51  ;;  %v5604_v51 = vld [vmem:[#allocation7 + $0x3a4] ss:$16 sps:$4 sm:$0xff]  }
 0x28f   :  { %1272 = vmatmul.mubr.bf16.vlgmr.msra.gmra.mrb[8].mxu0 %v595_v55  ;;  %1354 = vmatmul.mubr.bf16.vlgmr.msra.gmra.mrb[8].mxu1 %v595_v55  ;;  %v354_v55 = vrot.slane %v6722_v33, %v6739_v50 }
 0x290   :  { %1281 = vmatpush1.bf16.msra.mxu0 %v5524_v52  ;;  %1363 = vmatpush1.bf16.msra.mxu1 %v5527_v53  ;;  %v5607_v52 = vld [vmem:[#allocation7 + $0x3ac] ss:$16 sps:$4 sm:$0xff]   ;;  %v5602_v53 = vld [vmem:[#allocation7 + $0x3a0] ss:$16 sps:$4 sm:$0xff]  }
 0x291   :  { %1282 = vmatprep.subr.bf16.mxu0 %v5532_v56  ;;  %1364 = vmatprep.subr.bf16.mxu1 %v5535_v57  ;;  %v5610_v56 = vld [vmem:[#allocation7 + $0x3c4] ss:$16 sps:$4 sm:$0xff]   ;;  %v5613_v57 = vld [vmem:[#allocation7 + $0x3cc] ss:$16 sps:$4 sm:$0xff]   ;;  %v456_v31 = vadd.f32 %v6736_v46, %v354_v55  ;;  %v5673_v55 = vld [vmem:[#allocation10 + $0x10c] ss:$16 sps:$4 sm:$0xff]  }
 0x292   :  { %1312 = vmatprep.mubr.bf16.mxu0 %v598_v59  ;;  %1394 = vmatprep.mubr.bf16.mxu1 %v598_v59  ;;  %v5611_v59 = vld [vmem:[#allocation7 + $0x3c8] ss:$16 sps:$4 sm:$0xff]  }
 0x294   :  { %1283 = vmatpush1.bf16.msra.mxu0 %v5530_v60  ;;  %1365 = vmatpush1.bf16.msra.mxu1 %v5533_v61  ;;  %v5616_v60 = vld [vmem:[#allocation7 + $0x3e4] ss:$16 sps:$4 sm:$0xff]   ;;  %v5619_v61 = vld [vmem:[#allocation7 + $0x3ec] ss:$16 sps:$4 sm:$0xff]  }
 0x295   :  { %1284 = vmatprep.subr.bf16.mxu0 %v5538_v62  ;;  %1366 = vmatprep.subr.bf16.mxu1 %v5541_v63  ;;  %v5614_v62 = vld [vmem:[#allocation7 + $0x3e0] ss:$16 sps:$4 sm:$0xff]   ;;  %v5617_v63 = vld [vmem:[#allocation7 + $0x3e8] ss:$16 sps:$4 sm:$0xff]  }
 0x298   :  { %1285 = vmatpush1.bf16.msra.mxu0 %v5536_v1  ;;  %1367 = vmatpush1.bf16.msra.mxu1 %v5539_v2  ;;  %v464_v1 = vmax.f32 %v456_v31, 0.0  ;;  %v5674_v31 = vld [vmem:[#allocation10 + $0x120] ss:$16 sps:$4 sm:$0xff]  }
 0x299   :  { %1286 = vmatprep.subr.bf16.mxu0 %v5544_v3  ;;  %1368 = vmatprep.subr.bf16.mxu1 %v5547_v4 }
 0x29a   :  { %v597_v33 = vpack.c.bf16 %v464_v1, %v464_v1  ;;  %v5683_v1 = vld [vmem:[#allocation10 + $0x148] ss:$16 sps:$4 sm:$0xff]  }
 0x29c   :  { %1287 = vmatpush1.bf16.msra.mxu0 %v5542_v5  ;;  %1369 = vmatpush1.bf16.msra.mxu1 %v5545_v6 }
 0x29d   :  { %1288 = vmatprep.subr.bf16.mxu0 %v5550_v7  ;;  %1370 = vmatprep.subr.bf16.mxu1 %v5553_v8 }
 0x2a0   :  { %1289 = vmatpush1.bf16.msra.mxu0 %v5548_v9  ;;  %1371 = vmatpush1.bf16.msra.mxu1 %v5551_v10 }
 0x2a1   :  { %1290 = vmatprep.subr.bf16.mxu0 %v5556_v11  ;;  %1372 = vmatprep.subr.bf16.mxu1 %v5559_v12  ;;  %v5622_v11 = vld [vmem:[#allocation10 + $0x4] ss:$16 sps:$4 sm:$0xff]   ;;  %v5625_v12 = vld [vmem:[#allocation10 + $0xc] ss:$16 sps:$4 sm:$0xff]  }
 0x2a4   :  { %1291 = vmatpush1.bf16.msra.mxu0 %v5554_v13  ;;  %1373 = vmatpush1.bf16.msra.mxu1 %v5557_v14 }
 0x2a5   :  { %1292 = vmatprep.subr.bf16.mxu0 %v5562_v15  ;;  %1374 = vmatprep.subr.bf16.mxu1 %v5565_v16 }
 0x2a8   :  { %1293 = vmatpush1.bf16.msra.mxu0 %v5560_v17  ;;  %1375 = vmatpush1.bf16.msra.mxu1 %v5563_v18  ;;  %v5620_v17 = vld [vmem:[#allocation10] ss:$16 sps:$4 sm:$0xff]   ;;  %v5623_v18 = vld [vmem:[#allocation10 + $0x8] ss:$16 sps:$4 sm:$0xff]  }
 0x2a9   :  { %1294 = vmatprep.subr.bf16.mxu0 %v5568_v19  ;;  %1376 = vmatprep.subr.bf16.mxu1 %v5571_v21  ;;  %v5628_v19 = vld [vmem:[#allocation10 + $0x24] ss:$16 sps:$4 sm:$0xff]   ;;  %v5631_v21 = vld [vmem:[#allocation10 + $0x2c] ss:$16 sps:$4 sm:$0xff]  }
 0x2ac   :  { %1295 = vmatpush1.bf16.msra.mxu0 %v5566_v22  ;;  %1377 = vmatpush1.bf16.msra.mxu1 %v5569_v23  ;;  %v5626_v22 = vld [vmem:[#allocation10 + $0x20] ss:$16 sps:$4 sm:$0xff]   ;;  %v5629_v23 = vld [vmem:[#allocation10 + $0x28] ss:$16 sps:$4 sm:$0xff]  }
 0x2ad   :  { %1296 = vmatprep.subr.bf16.mxu0 %v5574_v24  ;;  %1378 = vmatprep.subr.bf16.mxu1 %v5577_v25  ;;  %v5634_v24 = vld [vmem:[#allocation10 + $0x44] ss:$16 sps:$4 sm:$0xff]   ;;  %v5637_v25 = vld [vmem:[#allocation10 + $0x4c] ss:$16 sps:$4 sm:$0xff]  }
 0x2b0   :  { %1297 = vmatpush1.bf16.msra.mxu0 %v5572_v26  ;;  %1379 = vmatpush1.bf16.msra.mxu1 %v5575_v27  ;;  %v5632_v26 = vld [vmem:[#allocation10 + $0x40] ss:$16 sps:$4 sm:$0xff]   ;;  %v5635_v27 = vld [vmem:[#allocation10 + $0x48] ss:$16 sps:$4 sm:$0xff]  }
 0x2b1   :  { %1298 = vmatprep.subr.bf16.mxu0 %v5580_v28  ;;  %1380 = vmatprep.subr.bf16.mxu1 %v5583_v29  ;;  %v5640_v28 = vld [vmem:[#allocation10 + $0x64] ss:$16 sps:$4 sm:$0xff]   ;;  %v5643_v29 = vld [vmem:[#allocation10 + $0x6c] ss:$16 sps:$4 sm:$0xff]  }
 0x2b4   :  { %1299 = vmatpush1.bf16.msra.mxu0 %v5578_v30  ;;  %1381 = vmatpush1.bf16.msra.mxu1 %v5581_v35  ;;  %v5638_v30 = vld [vmem:[#allocation10 + $0x60] ss:$16 sps:$4 sm:$0xff]   ;;  %v5646_v35 = vld [vmem:[#allocation10 + $0x84] ss:$16 sps:$4 sm:$0xff]  }
 0x2b5   :  { %1300 = vmatprep.subr.bf16.mxu0 %v5586_v37  ;;  %1382 = vmatprep.subr.bf16.mxu1 %v5589_v38  ;;  %v5649_v37 = vld [vmem:[#allocation10 + $0x8c] ss:$16 sps:$4 sm:$0xff]   ;;  %v5644_v38 = vld [vmem:[#allocation10 + $0x80] ss:$16 sps:$4 sm:$0xff]  }
 0x2b8   :  { %1301 = vmatpush1.bf16.msra.mxu0 %v5584_v39  ;;  %1383 = vmatpush1.bf16.msra.mxu1 %v5587_v40  ;;  %v5647_v39 = vld [vmem:[#allocation10 + $0x88] ss:$16 sps:$4 sm:$0xff]   ;;  %v5652_v40 = vld [vmem:[#allocation10 + $0xa4] ss:$16 sps:$4 sm:$0xff]  }
 0x2b9   :  { %1302 = vmatprep.subr.bf16.mxu0 %v5592_v41  ;;  %1384 = vmatprep.subr.bf16.mxu1 %v5595_v42  ;;  %v5655_v41 = vld [vmem:[#allocation10 + $0xac] ss:$16 sps:$4 sm:$0xff]   ;;  %v5650_v42 = vld [vmem:[#allocation10 + $0xa0] ss:$16 sps:$4 sm:$0xff]  }
 0x2bc   :  { %1303 = vmatpush1.bf16.msra.mxu0 %v5590_v43  ;;  %1385 = vmatpush1.bf16.msra.mxu1 %v5593_v44  ;;  %v5653_v43 = vld [vmem:[#allocation10 + $0xa8] ss:$16 sps:$4 sm:$0xff]   ;;  %v5658_v44 = vld [vmem:[#allocation10 + $0xc4] ss:$16 sps:$4 sm:$0xff]  }
 0x2bd   :  { %1304 = vmatprep.subr.bf16.mxu0 %v5598_v45  ;;  %1386 = vmatprep.subr.bf16.mxu1 %v5601_v47  ;;  %v5661_v45 = vld [vmem:[#allocation10 + $0xcc] ss:$16 sps:$4 sm:$0xff]   ;;  %v5656_v47 = vld [vmem:[#allocation10 + $0xc0] ss:$16 sps:$4 sm:$0xff]  }
 0x2c0   :  { %1305 = vmatpush1.bf16.msra.mxu0 %v5596_v48  ;;  %1387 = vmatpush1.bf16.msra.mxu1 %v5599_v49  ;;  %v5659_v48 = vld [vmem:[#allocation10 + $0xc8] ss:$16 sps:$4 sm:$0xff]   ;;  %v5664_v49 = vld [vmem:[#allocation10 + $0xe4] ss:$16 sps:$4 sm:$0xff]  }
 0x2c1   :  { %1306 = vmatprep.subr.bf16.mxu0 %v5604_v51  ;;  %1388 = vmatprep.subr.bf16.mxu1 %v5607_v52  ;;  %v5667_v51 = vld [vmem:[#allocation10 + $0xec] ss:$16 sps:$4 sm:$0xff]   ;;  %v5662_v52 = vld [vmem:[#allocation10 + $0xe0] ss:$16 sps:$4 sm:$0xff]  }
 0x2c4   :  { %1307 = vmatpush1.bf16.msra.mxu0 %v5602_v53  ;;  %1389 = vmatpush1.bf16.msra.mxu1 %v5605_v54  ;;  %v5665_v53 = vld [vmem:[#allocation10 + $0xe8] ss:$16 sps:$4 sm:$0xff]   ;;  %v5670_v54 = vld [vmem:[#allocation10 + $0x104] ss:$16 sps:$4 sm:$0xff]  }
 0x2c5   :  { %1308 = vmatprep.subr.bf16.mxu0 %v5610_v56  ;;  %1390 = vmatprep.subr.bf16.mxu1 %v5613_v57  ;;  %v5668_v56 = vld [vmem:[#allocation10 + $0x100] ss:$16 sps:$4 sm:$0xff]   ;;  %v5671_v57 = vld [vmem:[#allocation10 + $0x108] ss:$16 sps:$4 sm:$0xff]  }
 0x2c8   :  { %1309 = vmatpush1.bf16.msra.mxu0 %v5608_v58  ;;  %1391 = vmatpush1.bf16.msra.mxu1 %v5611_v59  ;;  %v5676_v58 = vld [vmem:[#allocation10 + $0x124] ss:$16 sps:$4 sm:$0xff]   ;;  %v5679_v59 = vld [vmem:[#allocation10 + $0x12c] ss:$16 sps:$4 sm:$0xff]  }
 0x2c9   :  { %1310 = vmatprep.subr.bf16.mxu0 %v5616_v60  ;;  %1392 = vmatprep.subr.bf16.mxu1 %v5619_v61  ;;  %v5677_v60 = vld [vmem:[#allocation10 + $0x128] ss:$16 sps:$4 sm:$0xff]   ;;  %v5682_v61 = vld [vmem:[#allocation10 + $0x144] ss:$16 sps:$4 sm:$0xff]  }
 0x2cc   :  { %1311 = vmatpush1.bf16.msra.mxu0 %v5614_v62  ;;  %1393 = vmatpush1.bf16.msra.mxu1 %v5617_v63  ;;  %v5685_v62 = vld [vmem:[#allocation10 + $0x14c] ss:$16 sps:$4 sm:$0xff]   ;;  %v5680_v63 = vld [vmem:[#allocation10 + $0x140] ss:$16 sps:$4 sm:$0xff]  }
 0x2cf   :  { %1313 = vmatmul.mubr.bf16.vlgmr.msra.gmra.mrb[8].mxu0 %v597_v33  ;;  %1395 = vmatmul.mubr.bf16.vlgmr.msra.gmra.mrb[8].mxu1 %v597_v33  ;;  %v5688_v33 = vld [vmem:[#allocation10 + $0x164] ss:$16 sps:$4 sm:$0xff]  }
 0x2d0   :  { %1472 = vmatprep.mubr.bf16.mxu0 %v6433_v0  ;;  %1513 = vmatprep.mubr.bf16.mxu1 %v6433_v0 }
 0x3a2   :  { %v1314_v46 = vpop.f32.mrb[8].mxu0  ;;  %v1396_v2 = vpop.f32.mrb[8].mxu1 }
 0x3a3   :  { %v1403_v3 = vpack.c.bf16 %v1314_v46, %v1314_v46  ;;  %v1405_v4 = vpack.c.bf16 %v1396_v2, %v1396_v2  ;;  %v1316_v5 = vpop.f32.mrb[9].mxu0  ;;  %v1398_v6 = vpop.f32.mrb[9].mxu1  ;;  %v5691_v46 = vld [vmem:[#allocation10 + $0x16c] ss:$16 sps:$4 sm:$0xff]   ;;  %v5686_v2 = vld [vmem:[#allocation10 + $0x160] ss:$16 sps:$4 sm:$0xff]  }
 0x3a4   :  { %v1404_v7 = vpack.c.bf16 %v1316_v5, %v1316_v5  ;;  %v1406_v8 = vpack.c.bf16 %v1398_v6, %v1398_v6  ;;  %v1318_v9 = vpop.f32.mrb[10].mxu0  ;;  %v1400_v10 = vpop.f32.mrb[10].mxu1  ;;  %v5697_v5 = vld [vmem:[#allocation10 + $0x18c] ss:$16 sps:$4 sm:$0xff]   ;;  %v5692_v6 = vld [vmem:[#allocation10 + $0x180] ss:$16 sps:$4 sm:$0xff]  }
 0x3a5   :  { %v1429_v13 = vsel %vm367_vm1, %v1403_v3, 0  ;;  %v1435_v14 = vsel %vm367_vm1, %v1405_v4, 0  ;;  %v1319_v15 = vpop.f32.mrb[11].mxu0  ;;  %v1401_v16 = vpop.f32.mrb[11].mxu1  ;;  %v5689_v3 = vld [vmem:[#allocation10 + $0x168] ss:$16 sps:$4 sm:$0xff]  }
 0x3a6   :  { %4891 = vmatprep.subr.msk.bf16.mxu0 %vm367_vm1, %v1404_v7  ;;  %4893 = vmatprep.subr.msk.bf16.mxu1 %vm367_vm1, %v1406_v8  ;;  %v5694_v4 = vld [vmem:[#allocation10 + $0x184] ss:$16 sps:$4 sm:$0xff]   ;;  %v5695_v7 = vld [vmem:[#allocation10 + $0x188] ss:$16 sps:$4 sm:$0xff]   ;;  %v5703_v9 = vld [vmem:[#allocation10 + $0x1ac] ss:$16 sps:$4 sm:$0xff]  }
 0x3a7   :  { %1441 = vmatpush1.bf16.msra.mxu0 %v1429_v13  ;;  %1482 = vmatpush1.bf16.msra.mxu1 %v1435_v14  ;;  %v5700_v8 = vld [vmem:[#allocation10 + $0x1a4] ss:$16 sps:$4 sm:$0xff]   ;;  %v5698_v10 = vld [vmem:[#allocation10 + $0x1a0] ss:$16 sps:$4 sm:$0xff]   ;;  %v5709_v13 = vld [vmem:[#allocation10 + $0x1cc] ss:$16 sps:$4 sm:$0xff]  }
 0x3a8   :  { %2299 = vmatprep.subr.bf16.mxu0 %v5622_v11  ;;  %2381 = vmatprep.subr.bf16.mxu1 %v5625_v12  ;;  %v5701_v11 = vld [vmem:[#allocation10 + $0x1a8] ss:$16 sps:$4 sm:$0xff]   ;;  %v5706_v12 = vld [vmem:[#allocation10 + $0x1c4] ss:$16 sps:$4 sm:$0xff]   ;;  %v5704_v14 = vld [vmem:[#allocation10 + $0x1c0] ss:$16 sps:$4 sm:$0xff]  }
 0x3a9   :  { %v5707_v15 = vld [vmem:[#allocation10 + $0x1c8] ss:$16 sps:$4 sm:$0xff]   ;;  %v5712_v16 = vld [vmem:[#allocation10 + $0x1e4] ss:$16 sps:$4 sm:$0xff]  }
 0x3aa   :  { %4892 = vmatmul.mubr.msk.bf16.vlgmr.msra.gmra.mrb[12].mxu0 %vm363_vm2, %v6709_v20  ;;  %4894 = vmatmul.mubr.msk.bf16.vlgmr.msra.gmra.mrb[12].mxu1 %vm363_vm2, %v6709_v20  ;;  %v5641_v20 = vld [vmem:[#allocation10 + $0x68] ss:$16 sps:$4 sm:$0xff]  }
 0x3ab   :  { %2300 = vmatpush1.bf16.msra.mxu0 %v5620_v17  ;;  %2382 = vmatpush1.bf16.msra.mxu1 %v5623_v18  ;;  %v5715_v17 = vld [vmem:[#allocation10 + $0x1ec] ss:$16 sps:$4 sm:$0xff]   ;;  %v5710_v18 = vld [vmem:[#allocation10 + $0x1e0] ss:$16 sps:$4 sm:$0xff]  }
 0x3ac   :  { %2301 = vmatprep.subr.bf16.mxu0 %v5628_v19  ;;  %2383 = vmatprep.subr.bf16.mxu1 %v5631_v21  ;;  %v5713_v19 = vld [vmem:[#allocation10 + $0x1e8] ss:$16 sps:$4 sm:$0xff]   ;;  %v5718_v21 = vld [vmem:[#allocation10 + $0x204] ss:$16 sps:$4 sm:$0xff]  }
 0x3af   :  { %2302 = vmatpush1.bf16.msra.mxu0 %v5626_v22  ;;  %2384 = vmatpush1.bf16.msra.mxu1 %v5629_v23  ;;  %v5721_v22 = vld [vmem:[#allocation10 + $0x20c] ss:$16 sps:$4 sm:$0xff]  }
 0x3b0   :  { %2303 = vmatprep.subr.bf16.mxu0 %v5634_v24  ;;  %2385 = vmatprep.subr.bf16.mxu1 %v5637_v25  ;;  %v6754_v23 = vld [vmem:[#allocation8] sm:$0xf] }
 0x3b1   :  { %v1411_v24 = vrot.slane %v6754_v23, %v6720_v32  ;;  %v1415_v25 = vrot.slane %v6754_v23, %v6725_v34 }
 0x3b3   :  { %2304 = vmatpush1.bf16.msra.mxu0 %v5632_v26  ;;  %2386 = vmatpush1.bf16.msra.mxu1 %v5635_v27  ;;  %v1423_v26 = vrot.slane %v6754_v23, %v6730_v36 }
 0x3b4   :  { %2305 = vmatprep.subr.bf16.mxu0 %v5640_v28  ;;  %2387 = vmatprep.subr.bf16.mxu1 %v5643_v29 }
 0x3b7   :  { %2306 = vmatpush1.bf16.msra.mxu0 %v5638_v30  ;;  %2388 = vmatpush1.bf16.msra.mxu1 %v5641_v20 }
 0x3b8   :  { %2307 = vmatprep.subr.bf16.mxu0 %v5646_v35  ;;  %2389 = vmatprep.subr.bf16.mxu1 %v5649_v37 }
 0x3bb   :  { %2308 = vmatpush1.bf16.msra.mxu0 %v5644_v38  ;;  %2390 = vmatpush1.bf16.msra.mxu1 %v5647_v39 }
 0x3bc   :  { %2309 = vmatprep.subr.bf16.mxu0 %v5652_v40  ;;  %2391 = vmatprep.subr.bf16.mxu1 %v5655_v41 }
 0x3bf   :  { %2310 = vmatpush1.bf16.msra.mxu0 %v5650_v42  ;;  %2392 = vmatpush1.bf16.msra.mxu1 %v5653_v43 }
 0x3c0   :  { %2311 = vmatprep.subr.bf16.mxu0 %v5658_v44  ;;  %2393 = vmatprep.subr.bf16.mxu1 %v5661_v45 }
 0x3c3   :  { %2312 = vmatpush1.bf16.msra.mxu0 %v5656_v47  ;;  %2394 = vmatpush1.bf16.msra.mxu1 %v5659_v48  ;;  %v5716_v47 = vld [vmem:[#allocation10 + $0x200] ss:$16 sps:$4 sm:$0xff]   ;;  %v5719_v48 = vld [vmem:[#allocation10 + $0x208] ss:$16 sps:$4 sm:$0xff]  }
 0x3c4   :  { %2313 = vmatprep.subr.bf16.mxu0 %v5664_v49  ;;  %2395 = vmatprep.subr.bf16.mxu1 %v5667_v51  ;;  %v5724_v51 = vld [vmem:[#allocation10 + $0x224] ss:$16 sps:$4 sm:$0xff]  }
 0x3c7   :  { %2314 = vmatpush1.bf16.msra.mxu0 %v5662_v52  ;;  %2396 = vmatpush1.bf16.msra.mxu1 %v5665_v53  ;;  %v5727_v52 = vld [vmem:[#allocation10 + $0x22c] ss:$16 sps:$4 sm:$0xff]  }
 0x3c8   :  { %2315 = vmatprep.subr.bf16.mxu0 %v5670_v54  ;;  %2397 = vmatprep.subr.bf16.mxu1 %v5673_v55  ;;  %v5722_v54 = vld [vmem:[#allocation10 + $0x220] ss:$16 sps:$4 sm:$0xff]   ;;  %v5725_v55 = vld [vmem:[#allocation10 + $0x228] ss:$16 sps:$4 sm:$0xff]  }
 0x3cb   :  { %2316 = vmatpush1.bf16.msra.mxu0 %v5668_v56  ;;  %2398 = vmatpush1.bf16.msra.mxu1 %v5671_v57  ;;  %v5730_v56 = vld [vmem:[#allocation10 + $0x244] ss:$16 sps:$4 sm:$0xff]   ;;  %v5733_v57 = vld [vmem:[#allocation10 + $0x24c] ss:$16 sps:$4 sm:$0xff]  }
 0x3cc   :  { %2317 = vmatprep.subr.bf16.mxu0 %v5676_v58  ;;  %2399 = vmatprep.subr.bf16.mxu1 %v5679_v59  ;;  %v5728_v58 = vld [vmem:[#allocation10 + $0x240] ss:$16 sps:$4 sm:$0xff]   ;;  %v5731_v59 = vld [vmem:[#allocation10 + $0x248] ss:$16 sps:$4 sm:$0xff]  }
 0x3cf   :  { %2318 = vmatpush1.bf16.msra.mxu0 %v5674_v31  ;;  %2400 = vmatpush1.bf16.msra.mxu1 %v5677_v60  ;;  %v5736_v31 = vld [vmem:[#allocation10 + $0x264] ss:$16 sps:$4 sm:$0xff]   ;;  %v5739_v60 = vld [vmem:[#allocation10 + $0x26c] ss:$16 sps:$4 sm:$0xff]  }
 0x3d0   :  { %2319 = vmatprep.subr.bf16.mxu0 %v5682_v61  ;;  %2401 = vmatprep.subr.bf16.mxu1 %v5685_v62  ;;  %v5734_v61 = vld [vmem:[#allocation10 + $0x260] ss:$16 sps:$4 sm:$0xff]   ;;  %v5737_v62 = vld [vmem:[#allocation10 + $0x268] ss:$16 sps:$4 sm:$0xff]  }
 0x3d3   :  { %2320 = vmatpush1.bf16.msra.mxu0 %v5680_v63  ;;  %2402 = vmatpush1.bf16.msra.mxu1 %v5683_v1  ;;  %v5742_v63 = vld [vmem:[#allocation10 + $0x284] ss:$16 sps:$4 sm:$0xff]   ;;  %v5745_v1 = vld [vmem:[#allocation10 + $0x28c] ss:$16 sps:$4 sm:$0xff]  }
 0x3d4   :  { %2321 = vmatprep.subr.bf16.mxu0 %v5688_v33  ;;  %2403 = vmatprep.subr.bf16.mxu1 %v5691_v46  ;;  %v5740_v33 = vld [vmem:[#allocation10 + $0x280] ss:$16 sps:$4 sm:$0xff]   ;;  %v5743_v46 = vld [vmem:[#allocation10 + $0x288] ss:$16 sps:$4 sm:$0xff]  }
 0x3d7   :  { %2322 = vmatpush1.bf16.msra.mxu0 %v5686_v2  ;;  %2404 = vmatpush1.bf16.msra.mxu1 %v5689_v3  ;;  %v5748_v2 = vld [vmem:[#allocation10 + $0x2a4] ss:$16 sps:$4 sm:$0xff]   ;;  %v5751_v3 = vld [vmem:[#allocation10 + $0x2ac] ss:$16 sps:$4 sm:$0xff]  }
 0x3d8   :  { %2323 = vmatprep.subr.bf16.mxu0 %v5694_v4  ;;  %2405 = vmatprep.subr.bf16.mxu1 %v5697_v5  ;;  %v5746_v4 = vld [vmem:[#allocation10 + $0x2a0] ss:$16 sps:$4 sm:$0xff]   ;;  %v5749_v5 = vld [vmem:[#allocation10 + $0x2a8] ss:$16 sps:$4 sm:$0xff]  }
 0x3db   :  { %2324 = vmatpush1.bf16.msra.mxu0 %v5692_v6  ;;  %2406 = vmatpush1.bf16.msra.mxu1 %v5695_v7  ;;  %v5754_v6 = vld [vmem:[#allocation10 + $0x2c4] ss:$16 sps:$4 sm:$0xff]   ;;  %v5757_v7 = vld [vmem:[#allocation10 + $0x2cc] ss:$16 sps:$4 sm:$0xff]  }
 0x3dc   :  { %2325 = vmatprep.subr.bf16.mxu0 %v5700_v8  ;;  %2407 = vmatprep.subr.bf16.mxu1 %v5703_v9  ;;  %v5752_v8 = vld [vmem:[#allocation10 + $0x2c0] ss:$16 sps:$4 sm:$0xff]   ;;  %v5755_v9 = vld [vmem:[#allocation10 + $0x2c8] ss:$16 sps:$4 sm:$0xff]  }
 0x3df   :  { %2326 = vmatpush1.bf16.msra.mxu0 %v5698_v10  ;;  %2408 = vmatpush1.bf16.msra.mxu1 %v5701_v11  ;;  %v5760_v10 = vld [vmem:[#allocation10 + $0x2e4] ss:$16 sps:$4 sm:$0xff]   ;;  %v5763_v11 = vld [vmem:[#allocation10 + $0x2ec] ss:$16 sps:$4 sm:$0xff]  }
 0x3e0   :  { %2327 = vmatprep.subr.bf16.mxu0 %v5706_v12  ;;  %2409 = vmatprep.subr.bf16.mxu1 %v5709_v13  ;;  %v5758_v12 = vld [vmem:[#allocation10 + $0x2e0] ss:$16 sps:$4 sm:$0xff]   ;;  %v5761_v13 = vld [vmem:[#allocation10 + $0x2e8] ss:$16 sps:$4 sm:$0xff]  }
 0x3e3   :  { %2328 = vmatpush1.bf16.msra.mxu0 %v5704_v14  ;;  %2410 = vmatpush1.bf16.msra.mxu1 %v5707_v15  ;;  %v5766_v14 = vld [vmem:[#allocation10 + $0x304] ss:$16 sps:$4 sm:$0xff]   ;;  %v5769_v15 = vld [vmem:[#allocation10 + $0x30c] ss:$16 sps:$4 sm:$0xff]  }
 0x3e4   :  { %2329 = vmatprep.subr.bf16.mxu0 %v5712_v16  ;;  %2411 = vmatprep.subr.bf16.mxu1 %v5715_v17  ;;  %v5764_v16 = vld [vmem:[#allocation10 + $0x300] ss:$16 sps:$4 sm:$0xff]   ;;  %v5767_v17 = vld [vmem:[#allocation10 + $0x308] ss:$16 sps:$4 sm:$0xff]  }
 0x3e7   :  { %2330 = vmatpush1.bf16.msra.mxu0 %v5710_v18  ;;  %2412 = vmatpush1.bf16.msra.mxu1 %v5713_v19  ;;  %v5772_v18 = vld [vmem:[#allocation10 + $0x324] ss:$16 sps:$4 sm:$0xff]   ;;  %v5775_v19 = vld [vmem:[#allocation10 + $0x32c] ss:$16 sps:$4 sm:$0xff]  }
 0x3e8   :  { %2340 = vmatprep.subr.bf16.mxu0 %v5718_v21  ;;  %2422 = vmatprep.subr.bf16.mxu1 %v5721_v22  ;;  %v5770_v21 = vld [vmem:[#allocation10 + $0x320] ss:$16 sps:$4 sm:$0xff]   ;;  %v5773_v22 = vld [vmem:[#allocation10 + $0x328] ss:$16 sps:$4 sm:$0xff]  }
 0x47d   :  { %v1474_v27 = vpop.f32.mrb[12].mxu0  ;;  %v6762_v28 = vpop.f32.mrb[12].mxu1 }
 0x47e   :  { %v1475_v29 = vadd.f32 %v1474_v27, %v1411_v24  ;;  %v1476_v30 = vpop.f32.mrb[13].mxu0  ;;  %v1517_v20 = vpop.f32.mrb[13].mxu1  ;;  %v5778_v24 = vld [vmem:[#allocation10 + $0x344] ss:$16 sps:$4 sm:$0xff]   ;;  %v5779_v27 = vld [vmem:[#allocation10 + $0x348] ss:$16 sps:$4 sm:$0xff]  }
 0x47f   :  { %v1477_v35 = vadd.f32 %v1476_v30, %v1415_v25  ;;  %v1478_v37 = vpop.f32.mrb[14].mxu0  ;;  %v1518_v38 = vadd.f32 %v1517_v20, %v1423_v26  ;;  %v1519_v39 = vpop.f32.mrb[14].mxu1  ;;  %v5781_v25 = vld [vmem:[#allocation10 + $0x34c] ss:$16 sps:$4 sm:$0xff]   ;;  %v5776_v26 = vld [vmem:[#allocation10 + $0x340] ss:$16 sps:$4 sm:$0xff]  }
 0x480   :  { %v1522_v40 = vmax.f32 %v1475_v29, 0.0  ;;  %v1479_v41 = vpop.f32.mrb[15].mxu0  ;;  %v1520_v42 = vpop.f32.mrb[15].mxu1  ;;  %v5784_v29 = vld [vmem:[#allocation10 + $0x364] ss:$16 sps:$4 sm:$0xff]  }
 0x481   :  { %v1523_v43 = vmax.f32 %v1477_v35, 0.0  ;;  %v1525_v44 = vmax.f32 %v1518_v38, 0.0  ;;  %v5787_v30 = vld [vmem:[#allocation10 + $0x36c] ss:$16 sps:$4 sm:$0xff]   ;;  %v5782_v20 = vld [vmem:[#allocation10 + $0x360] ss:$16 sps:$4 sm:$0xff]  }
 0x482   :  { %v1655_v49 = vpack.c.bf16 %v1522_v40, %v1522_v40  ;;  %v5785_v35 = vld [vmem:[#allocation10 + $0x368] ss:$16 sps:$4 sm:$0xff]   ;;  %v5790_v37 = vld [vmem:[#allocation10 + $0x384] ss:$16 sps:$4 sm:$0xff]   ;;  %v5793_v38 = vld [vmem:[#allocation10 + $0x38c] ss:$16 sps:$4 sm:$0xff]  }
 0x483   :  { %v1656_v45 = vpack.c.bf16 %v1523_v43, %v1523_v43  ;;  %v1658_v53 = vpack.c.bf16 %v1525_v44, %v1525_v44  ;;  %v5788_v39 = vld [vmem:[#allocation10 + $0x380] ss:$16 sps:$4 sm:$0xff]   ;;  %v5791_v40 = vld [vmem:[#allocation10 + $0x388] ss:$16 sps:$4 sm:$0xff]   ;;  %v5796_v41 = vld [vmem:[#allocation10 + $0x3a4] ss:$16 sps:$4 sm:$0xff]  }
 0x484   :  { %v5799_v42 = vld [vmem:[#allocation10 + $0x3ac] ss:$16 sps:$4 sm:$0xff]   ;;  %v5794_v43 = vld [vmem:[#allocation10 + $0x3a0] ss:$16 sps:$4 sm:$0xff]   ;;  %v5797_v44 = vld [vmem:[#allocation10 + $0x3a8] ss:$16 sps:$4 sm:$0xff]  }
 0x485   :  { %2331 = vmatprep.mubr.bf16.mxu0 %v1656_v45  ;;  %2413 = vmatprep.mubr.bf16.mxu1 %v1656_v45  ;;  %v1419_v45 = vrot.slane %v6754_v23, %v6739_v50 }
 0x486   :  { %2332 = vmatmul.mubr.bf16.vlgmr.msra.gmra.mrb[16].mxu0 %v1655_v49  ;;  %2414 = vmatmul.mubr.bf16.vlgmr.msra.gmra.mrb[16].mxu1 %v1655_v49  ;;  %v5800_v49 = vld [vmem:[#allocation10 + $0x3c0] ss:$16 sps:$4 sm:$0xff]  }
 0x487   :  { %2341 = vmatpush1.bf16.msra.mxu0 %v5716_v47  ;;  %2423 = vmatpush1.bf16.msra.mxu1 %v5719_v48  ;;  %v5802_v47 = vld [vmem:[#allocation10 + $0x3c4] ss:$16 sps:$4 sm:$0xff]   ;;  %v5805_v48 = vld [vmem:[#allocation10 + $0x3cc] ss:$16 sps:$4 sm:$0xff]  }
 0x488   :  { %2342 = vmatprep.subr.bf16.mxu0 %v5724_v51  ;;  %2424 = vmatprep.subr.bf16.mxu1 %v5727_v52  ;;  %v5803_v51 = vld [vmem:[#allocation10 + $0x3c8] ss:$16 sps:$4 sm:$0xff]   ;;  %v1516_v52 = vadd.f32 %v6762_v28, %v1419_v45 }
 0x489   :  { %2372 = vmatprep.mubr.bf16.mxu0 %v1658_v53  ;;  %2454 = vmatprep.mubr.bf16.mxu1 %v1658_v53  ;;  %v5808_v53 = vld [vmem:[#allocation10 + $0x3e4] ss:$16 sps:$4 sm:$0xff]   ;;  %v5862_v45 = vld [vmem:[#allocation13 + $0x104] ss:$16 sps:$4 sm:$0xff]  }
 0x48b   :  { %2343 = vmatpush1.bf16.msra.mxu0 %v5722_v54  ;;  %2425 = vmatpush1.bf16.msra.mxu1 %v5725_v55  ;;  %v5811_v54 = vld [vmem:[#allocation10 + $0x3ec] ss:$16 sps:$4 sm:$0xff]   ;;  %v5806_v55 = vld [vmem:[#allocation10 + $0x3e0] ss:$16 sps:$4 sm:$0xff]  }
 0x48c   :  { %2344 = vmatprep.subr.bf16.mxu0 %v5730_v56  ;;  %2426 = vmatprep.subr.bf16.mxu1 %v5733_v57  ;;  %v5809_v56 = vld [vmem:[#allocation10 + $0x3e8] ss:$16 sps:$4 sm:$0xff]   ;;  %v1524_v57 = vmax.f32 %v1516_v52, 0.0  ;;  %v5871_v52 = vld [vmem:[#allocation13 + $0x12c] ss:$16 sps:$4 sm:$0xff]  }
 0x48e   :  { %v1657_v23 = vpack.c.bf16 %v1524_v57, %v1524_v57  ;;  %v5872_v57 = vld [vmem:[#allocation13 + $0x140] ss:$16 sps:$4 sm:$0xff]  }
 0x48f   :  { %2345 = vmatpush1.bf16.msra.mxu0 %v5728_v58  ;;  %2427 = vmatpush1.bf16.msra.mxu1 %v5731_v59 }
 0x490   :  { %2346 = vmatprep.subr.bf16.mxu0 %v5736_v31  ;;  %2428 = vmatprep.subr.bf16.mxu1 %v5739_v60 }
 0x493   :  { %2347 = vmatpush1.bf16.msra.mxu0 %v5734_v61  ;;  %2429 = vmatpush1.bf16.msra.mxu1 %v5737_v62 }
 0x494   :  { %2348 = vmatprep.subr.bf16.mxu0 %v5742_v63  ;;  %2430 = vmatprep.subr.bf16.mxu1 %v5745_v1 }
 0x497   :  { %2349 = vmatpush1.bf16.msra.mxu0 %v5740_v33  ;;  %2431 = vmatpush1.bf16.msra.mxu1 %v5743_v46  ;;  %v5814_v46 = vld [vmem:[#allocation13 + $0x4] ss:$16 sps:$4 sm:$0xff]  }
 0x498   :  { %2350 = vmatprep.subr.bf16.mxu0 %v5748_v2  ;;  %2432 = vmatprep.subr.bf16.mxu1 %v5751_v3  ;;  %v5817_v2 = vld [vmem:[#allocation13 + $0xc] ss:$16 sps:$4 sm:$0xff]  }
 0x49b   :  { %2351 = vmatpush1.bf16.msra.mxu0 %v5746_v4  ;;  %2433 = vmatpush1.bf16.msra.mxu1 %v5749_v5 }
 0x49c   :  { %2352 = vmatprep.subr.bf16.mxu0 %v5754_v6  ;;  %2434 = vmatprep.subr.bf16.mxu1 %v5757_v7  ;;  %v5812_v7 = vld [vmem:[#allocation13] ss:$16 sps:$4 sm:$0xff]  }
 0x49f   :  { %2353 = vmatpush1.bf16.msra.mxu0 %v5752_v8  ;;  %2435 = vmatpush1.bf16.msra.mxu1 %v5755_v9  ;;  %v5815_v8 = vld [vmem:[#allocation13 + $0x8] ss:$16 sps:$4 sm:$0xff]   ;;  %v5820_v9 = vld [vmem:[#allocation13 + $0x24] ss:$16 sps:$4 sm:$0xff]  }
 0x4a0   :  { %2354 = vmatprep.subr.bf16.mxu0 %v5760_v10  ;;  %2436 = vmatprep.subr.bf16.mxu1 %v5763_v11  ;;  %v5823_v10 = vld [vmem:[#allocation13 + $0x2c] ss:$16 sps:$4 sm:$0xff]   ;;  %v6776_v11 = vld [vmem:[%s6990_s25] sm:$0xf] }
 0x4a3   :  { %2355 = vmatpush1.bf16.msra.mxu0 %v5758_v12  ;;  %2437 = vmatpush1.bf16.msra.mxu1 %v5761_v13  ;;  %v5818_v12 = vld [vmem:[#allocation13 + $0x20] ss:$16 sps:$4 sm:$0xff]   ;;  %v5821_v13 = vld [vmem:[#allocation13 + $0x28] ss:$16 sps:$4 sm:$0xff]  }
 0x4a4   :  { %2356 = vmatprep.subr.bf16.mxu0 %v5766_v14  ;;  %2438 = vmatprep.subr.bf16.mxu1 %v5769_v15  ;;  %v5826_v14 = vld [vmem:[#allocation13 + $0x44] ss:$16 sps:$4 sm:$0xff]   ;;  %v5829_v15 = vld [vmem:[#allocation13 + $0x4c] ss:$16 sps:$4 sm:$0xff]  }
 0x4a7   :  { %2357 = vmatpush1.bf16.msra.mxu0 %v5764_v16  ;;  %2439 = vmatpush1.bf16.msra.mxu1 %v5767_v17  ;;  %v5824_v16 = vld [vmem:[#allocation13 + $0x40] ss:$16 sps:$4 sm:$0xff]   ;;  %v5827_v17 = vld [vmem:[#allocation13 + $0x48] ss:$16 sps:$4 sm:$0xff]  }
 0x4a8   :  { %2358 = vmatprep.subr.bf16.mxu0 %v5772_v18  ;;  %2440 = vmatprep.subr.bf16.mxu1 %v5775_v19  ;;  %v5832_v18 = vld [vmem:[#allocation13 + $0x64] ss:$16 sps:$4 sm:$0xff]   ;;  %v5835_v19 = vld [vmem:[#allocation13 + $0x6c] ss:$16 sps:$4 sm:$0xff]  }
 0x4ab   :  { %2359 = vmatpush1.bf16.msra.mxu0 %v5770_v21  ;;  %2441 = vmatpush1.bf16.msra.mxu1 %v5773_v22  ;;  %v5830_v21 = vld [vmem:[#allocation13 + $0x60] ss:$16 sps:$4 sm:$0xff]   ;;  %v5833_v22 = vld [vmem:[#allocation13 + $0x68] ss:$16 sps:$4 sm:$0xff]  }
 0x4ac   :  { %2360 = vmatprep.subr.bf16.mxu0 %v5778_v24  ;;  %2442 = vmatprep.subr.bf16.mxu1 %v5781_v25  ;;  %v5838_v24 = vld [vmem:[#allocation13 + $0x84] ss:$16 sps:$4 sm:$0xff]   ;;  %v5841_v25 = vld [vmem:[#allocation13 + $0x8c] ss:$16 sps:$4 sm:$0xff]  }
 0x4af   :  { %2361 = vmatpush1.bf16.msra.mxu0 %v5776_v26  ;;  %2443 = vmatpush1.bf16.msra.mxu1 %v5779_v27  ;;  %v5836_v26 = vld [vmem:[#allocation13 + $0x80] ss:$16 sps:$4 sm:$0xff]   ;;  %v5839_v27 = vld [vmem:[#allocation13 + $0x88] ss:$16 sps:$4 sm:$0xff]  }
 0x4b0   :  { %2362 = vmatprep.subr.bf16.mxu0 %v5784_v29  ;;  %2444 = vmatprep.subr.bf16.mxu1 %v5787_v30  ;;  %v5844_v29 = vld [vmem:[#allocation13 + $0xa4] ss:$16 sps:$4 sm:$0xff]   ;;  %v5847_v30 = vld [vmem:[#allocation13 + $0xac] ss:$16 sps:$4 sm:$0xff]  }
 0x4b3   :  { %2363 = vmatpush1.bf16.msra.mxu0 %v5782_v20  ;;  %2445 = vmatpush1.bf16.msra.mxu1 %v5785_v35  ;;  %v5842_v20 = vld [vmem:[#allocation13 + $0xa0] ss:$16 sps:$4 sm:$0xff]   ;;  %v5845_v35 = vld [vmem:[#allocation13 + $0xa8] ss:$16 sps:$4 sm:$0xff]  }
 0x4b4   :  { %2364 = vmatprep.subr.bf16.mxu0 %v5790_v37  ;;  %2446 = vmatprep.subr.bf16.mxu1 %v5793_v38  ;;  %v5850_v37 = vld [vmem:[#allocation13 + $0xc4] ss:$16 sps:$4 sm:$0xff]   ;;  %v5853_v38 = vld [vmem:[#allocation13 + $0xcc] ss:$16 sps:$4 sm:$0xff]  }
 0x4b7   :  { %2365 = vmatpush1.bf16.msra.mxu0 %v5788_v39  ;;  %2447 = vmatpush1.bf16.msra.mxu1 %v5791_v40  ;;  %v5848_v39 = vld [vmem:[#allocation13 + $0xc0] ss:$16 sps:$4 sm:$0xff]   ;;  %v5851_v40 = vld [vmem:[#allocation13 + $0xc8] ss:$16 sps:$4 sm:$0xff]  }
 0x4b8   :  { %2366 = vmatprep.subr.bf16.mxu0 %v5796_v41  ;;  %2448 = vmatprep.subr.bf16.mxu1 %v5799_v42  ;;  %v5856_v41 = vld [vmem:[#allocation13 + $0xe4] ss:$16 sps:$4 sm:$0xff]   ;;  %v5859_v42 = vld [vmem:[#allocation13 + $0xec] ss:$16 sps:$4 sm:$0xff]  }
 0x4bb   :  { %2367 = vmatpush1.bf16.msra.mxu0 %v5794_v43  ;;  %2449 = vmatpush1.bf16.msra.mxu1 %v5797_v44  ;;  %v5854_v43 = vld [vmem:[#allocation13 + $0xe0] ss:$16 sps:$4 sm:$0xff]   ;;  %v5857_v44 = vld [vmem:[#allocation13 + $0xe8] ss:$16 sps:$4 sm:$0xff]  }
 0x4bc   :  { %2368 = vmatprep.subr.bf16.mxu0 %v5802_v47  ;;  %2450 = vmatprep.subr.bf16.mxu1 %v5805_v48  ;;  %v5865_v47 = vld [vmem:[#allocation13 + $0x10c] ss:$16 sps:$4 sm:$0xff]   ;;  %v5860_v48 = vld [vmem:[#allocation13 + $0x100] ss:$16 sps:$4 sm:$0xff]  }
 0x4bf   :  { %2369 = vmatpush1.bf16.msra.mxu0 %v5800_v49  ;;  %2451 = vmatpush1.bf16.msra.mxu1 %v5803_v51  ;;  %v5863_v49 = vld [vmem:[#allocation13 + $0x108] ss:$16 sps:$4 sm:$0xff]   ;;  %v5868_v51 = vld [vmem:[#allocation13 + $0x124] ss:$16 sps:$4 sm:$0xff]  }
 0x4c0   :  { %2370 = vmatprep.subr.bf16.mxu0 %v5808_v53  ;;  %2452 = vmatprep.subr.bf16.mxu1 %v5811_v54  ;;  %v5866_v53 = vld [vmem:[#allocation13 + $0x120] ss:$16 sps:$4 sm:$0xff]   ;;  %v5869_v54 = vld [vmem:[#allocation13 + $0x128] ss:$16 sps:$4 sm:$0xff]  }
 0x4c3   :  { %2371 = vmatpush1.bf16.msra.mxu0 %v5806_v55  ;;  %2453 = vmatpush1.bf16.msra.mxu1 %v5809_v56  ;;  %v5874_v55 = vld [vmem:[#allocation13 + $0x144] ss:$16 sps:$4 sm:$0xff]   ;;  %v5877_v56 = vld [vmem:[#allocation13 + $0x14c] ss:$16 sps:$4 sm:$0xff]  }
 0x4c6   :  { %2373 = vmatmul.mubr.bf16.vlgmr.msra.gmra.mrb[16].mxu0 %v1657_v23  ;;  %2455 = vmatmul.mubr.bf16.vlgmr.msra.gmra.mrb[16].mxu1 %v1657_v23  ;;  %v5875_v23 = vld [vmem:[#allocation13 + $0x148] ss:$16 sps:$4 sm:$0xff]  }
 0x4c7   :  { %2532 = vmatprep.mubr.bf16.mxu0 %v6433_v0  ;;  %2573 = vmatprep.mubr.bf16.mxu1 %v6433_v0 }
 0x599   :  { %v2374_v28 = vpop.f32.mrb[16].mxu0  ;;  %v2456_v58 = vpop.f32.mrb[16].mxu1 }
 0x59a   :  { %v2463_v59 = vpack.c.bf16 %v2374_v28, %v2374_v28  ;;  %v2465_v31 = vpack.c.bf16 %v2456_v58, %v2456_v58  ;;  %v2376_v60 = vpop.f32.mrb[17].mxu0  ;;  %v2458_v61 = vpop.f32.mrb[17].mxu1  ;;  %v5880_v28 = vld [vmem:[#allocation13 + $0x164] ss:$16 sps:$4 sm:$0xff]   ;;  %v5883_v58 = vld [vmem:[#allocation13 + $0x16c] ss:$16 sps:$4 sm:$0xff]  }
 0x59b   :  { %v2464_v62 = vpack.c.bf16 %v2376_v60, %v2376_v60  ;;  %v2466_v63 = vpack.c.bf16 %v2458_v61, %v2458_v61  ;;  %v2378_v1 = vpop.f32.mrb[18].mxu0  ;;  %v2460_v33 = vpop.f32.mrb[18].mxu1  ;;  %v5886_v60 = vld [vmem:[#allocation13 + $0x184] ss:$16 sps:$4 sm:$0xff]   ;;  %v5889_v61 = vld [vmem:[#allocation13 + $0x18c] ss:$16 sps:$4 sm:$0xff]  }
 0x59c   :  { %v2489_v3 = vsel %vm367_vm1, %v2463_v59, 0  ;;  %v2495_v4 = vsel %vm367_vm1, %v2465_v31, 0  ;;  %v2379_v5 = vpop.f32.mrb[19].mxu0  ;;  %v2461_v6 = vpop.f32.mrb[19].mxu1  ;;  %v5878_v59 = vld [vmem:[#allocation13 + $0x160] ss:$16 sps:$4 sm:$0xff]  }
 0x59d   :  { %5023 = vmatprep.subr.msk.bf16.mxu0 %vm367_vm1, %v2464_v62  ;;  %5025 = vmatprep.subr.msk.bf16.mxu1 %vm367_vm1, %v2466_v63  ;;  %v5881_v31 = vld [vmem:[#allocation13 + $0x168] ss:$16 sps:$4 sm:$0xff]   ;;  %v5884_v62 = vld [vmem:[#allocation13 + $0x180] ss:$16 sps:$4 sm:$0xff]   ;;  %v5892_v1 = vld [vmem:[#allocation13 + $0x1a4] ss:$16 sps:$4 sm:$0xff]  }
 0x59e   :  { %2501 = vmatpush1.bf16.msra.mxu0 %v2489_v3  ;;  %2542 = vmatpush1.bf16.msra.mxu1 %v2495_v4  ;;  %v5887_v63 = vld [vmem:[#allocation13 + $0x188] ss:$16 sps:$4 sm:$0xff]   ;;  %v5895_v33 = vld [vmem:[#allocation13 + $0x1ac] ss:$16 sps:$4 sm:$0xff]   ;;  %v5898_v3 = vld [vmem:[#allocation13 + $0x1c4] ss:$16 sps:$4 sm:$0xff]  }
 0x59f   :  { %3359 = vmatprep.subr.bf16.mxu0 %v5814_v46  ;;  %3441 = vmatprep.subr.bf16.mxu1 %v5817_v2  ;;  %v5890_v46 = vld [vmem:[#allocation13 + $0x1a0] ss:$16 sps:$4 sm:$0xff]   ;;  %v5893_v2 = vld [vmem:[#allocation13 + $0x1a8] ss:$16 sps:$4 sm:$0xff]   ;;  %v5901_v4 = vld [vmem:[#allocation13 + $0x1cc] ss:$16 sps:$4 sm:$0xff]  }
 0x5a0   :  { %v5896_v5 = vld [vmem:[#allocation13 + $0x1c0] ss:$16 sps:$4 sm:$0xff]   ;;  %v5899_v6 = vld [vmem:[#allocation13 + $0x1c8] ss:$16 sps:$4 sm:$0xff]  }
 0x5a1   :  { %5024 = vmatmul.mubr.msk.bf16.vlgmr.msra.gmra.mrb[20].mxu0 %vm363_vm2, %v6776_v11  ;;  %5026 = vmatmul.mubr.msk.bf16.vlgmr.msra.gmra.mrb[20].mxu1 %vm363_vm2, %v6776_v11 }
 0x5a2   :  { %3360 = vmatpush1.bf16.msra.mxu0 %v5812_v7  ;;  %3442 = vmatpush1.bf16.msra.mxu1 %v5815_v8  ;;  %v5904_v7 = vld [vmem:[#allocation13 + $0x1e4] ss:$16 sps:$4 sm:$0xff]   ;;  %v5907_v8 = vld [vmem:[#allocation13 + $0x1ec] ss:$16 sps:$4 sm:$0xff]  }
 0x5a3   :  { %3361 = vmatprep.subr.bf16.mxu0 %v5820_v9  ;;  %3443 = vmatprep.subr.bf16.mxu1 %v5823_v10  ;;  %v5902_v9 = vld [vmem:[#allocation13 + $0x1e0] ss:$16 sps:$4 sm:$0xff]   ;;  %v5905_v10 = vld [vmem:[#allocation13 + $0x1e8] ss:$16 sps:$4 sm:$0xff]  }
 0x5a6   :  { %3362 = vmatpush1.bf16.msra.mxu0 %v5818_v12  ;;  %3444 = vmatpush1.bf16.msra.mxu1 %v5821_v13  ;;  %v5910_v12 = vld [vmem:[#allocation13 + $0x204] ss:$16 sps:$4 sm:$0xff]   ;;  %v5913_v13 = vld [vmem:[#allocation13 + $0x20c] ss:$16 sps:$4 sm:$0xff]  }
 0x5a7   :  { %3363 = vmatprep.subr.bf16.mxu0 %v5826_v14  ;;  %3445 = vmatprep.subr.bf16.mxu1 %v5829_v15  ;;  %v6782_v14 = vld [vmem:[#allocation11] sm:$0xf] }
 0x5a8   :  { %v2471_v15 = vrot.slane %v6782_v14, %v6720_v32 }
 0x5aa   :  { %3364 = vmatpush1.bf16.msra.mxu0 %v5824_v16  ;;  %3446 = vmatpush1.bf16.msra.mxu1 %v5827_v17  ;;  %v2475_v16 = vrot.slane %v6782_v14, %v6725_v34  ;;  %v2483_v17 = vrot.slane %v6782_v14, %v6730_v36 }
 0x5ab   :  { %3365 = vmatprep.subr.bf16.mxu0 %v5832_v18  ;;  %3447 = vmatprep.subr.bf16.mxu1 %v5835_v19 }
 0x5ae   :  { %3366 = vmatpush1.bf16.msra.mxu0 %v5830_v21  ;;  %3448 = vmatpush1.bf16.msra.mxu1 %v5833_v22 }
 0x5af   :  { %3367 = vmatprep.subr.bf16.mxu0 %v5838_v24  ;;  %3449 = vmatprep.subr.bf16.mxu1 %v5841_v25 }
 0x5b2   :  { %3368 = vmatpush1.bf16.msra.mxu0 %v5836_v26  ;;  %3450 = vmatpush1.bf16.msra.mxu1 %v5839_v27 }
 0x5b3   :  { %3369 = vmatprep.subr.bf16.mxu0 %v5844_v29  ;;  %3451 = vmatprep.subr.bf16.mxu1 %v5847_v30 }
 0x5b6   :  { %3370 = vmatpush1.bf16.msra.mxu0 %v5842_v20  ;;  %3452 = vmatpush1.bf16.msra.mxu1 %v5845_v35 }
 0x5b7   :  { %3371 = vmatprep.subr.bf16.mxu0 %v5850_v37  ;;  %3453 = vmatprep.subr.bf16.mxu1 %v5853_v38 }
 0x5ba   :  { %3372 = vmatpush1.bf16.msra.mxu0 %v5848_v39  ;;  %3454 = vmatpush1.bf16.msra.mxu1 %v5851_v40  ;;  %v5908_v40 = vld [vmem:[#allocation13 + $0x200] ss:$16 sps:$4 sm:$0xff]  }
 0x5bb   :  { %3373 = vmatprep.subr.bf16.mxu0 %v5856_v41  ;;  %3455 = vmatprep.subr.bf16.mxu1 %v5859_v42  ;;  %v5911_v41 = vld [vmem:[#allocation13 + $0x208] ss:$16 sps:$4 sm:$0xff]  }
 0x5be   :  { %3374 = vmatpush1.bf16.msra.mxu0 %v5854_v43  ;;  %3456 = vmatpush1.bf16.msra.mxu1 %v5857_v44  ;;  %v5916_v43 = vld [vmem:[#allocation13 + $0x224] ss:$16 sps:$4 sm:$0xff]   ;;  %v5919_v44 = vld [vmem:[#allocation13 + $0x22c] ss:$16 sps:$4 sm:$0xff]  }
 0x5bf   :  { %3375 = vmatprep.subr.bf16.mxu0 %v5862_v45  ;;  %3457 = vmatprep.subr.bf16.mxu1 %v5865_v47  ;;  %v5914_v47 = vld [vmem:[#allocation13 + $0x220] ss:$16 sps:$4 sm:$0xff]  }
 0x5c2   :  { %3376 = vmatpush1.bf16.msra.mxu0 %v5860_v48  ;;  %3458 = vmatpush1.bf16.msra.mxu1 %v5863_v49  ;;  %v5917_v48 = vld [vmem:[#allocation13 + $0x228] ss:$16 sps:$4 sm:$0xff]   ;;  %v5922_v49 = vld [vmem:[#allocation13 + $0x244] ss:$16 sps:$4 sm:$0xff]  }
 0x5c3   :  { %3377 = vmatprep.subr.bf16.mxu0 %v5868_v51  ;;  %3459 = vmatprep.subr.bf16.mxu1 %v5871_v52  ;;  %v5925_v51 = vld [vmem:[#allocation13 + $0x24c] ss:$16 sps:$4 sm:$0xff]   ;;  %v5920_v52 = vld [vmem:[#allocation13 + $0x240] ss:$16 sps:$4 sm:$0xff]  }
 0x5c6   :  { %3378 = vmatpush1.bf16.msra.mxu0 %v5866_v53  ;;  %3460 = vmatpush1.bf16.msra.mxu1 %v5869_v54  ;;  %v5923_v53 = vld [vmem:[#allocation13 + $0x248] ss:$16 sps:$4 sm:$0xff]   ;;  %v5928_v54 = vld [vmem:[#allocation13 + $0x264] ss:$16 sps:$4 sm:$0xff]  }
 0x5c7   :  { %3379 = vmatprep.subr.bf16.mxu0 %v5874_v55  ;;  %3461 = vmatprep.subr.bf16.mxu1 %v5877_v56  ;;  %v5931_v55 = vld [vmem:[#allocation13 + $0x26c] ss:$16 sps:$4 sm:$0xff]   ;;  %v5926_v56 = vld [vmem:[#allocation13 + $0x260] ss:$16 sps:$4 sm:$0xff]  }
 0x5ca   :  { %3380 = vmatpush1.bf16.msra.mxu0 %v5872_v57  ;;  %3462 = vmatpush1.bf16.msra.mxu1 %v5875_v23  ;;  %v5929_v57 = vld [vmem:[#allocation13 + $0x268] ss:$16 sps:$4 sm:$0xff]   ;;  %v5934_v23 = vld [vmem:[#allocation13 + $0x284] ss:$16 sps:$4 sm:$0xff]  }
 0x5cb   :  { %3381 = vmatprep.subr.bf16.mxu0 %v5880_v28  ;;  %3463 = vmatprep.subr.bf16.mxu1 %v5883_v58  ;;  %v5937_v28 = vld [vmem:[#allocation13 + $0x28c] ss:$16 sps:$4 sm:$0xff]   ;;  %v5932_v58 = vld [vmem:[#allocation13 + $0x280] ss:$16 sps:$4 sm:$0xff]  }
 0x5ce   :  { %3382 = vmatpush1.bf16.msra.mxu0 %v5878_v59  ;;  %3464 = vmatpush1.bf16.msra.mxu1 %v5881_v31  ;;  %v5935_v59 = vld [vmem:[#allocation13 + $0x288] ss:$16 sps:$4 sm:$0xff]   ;;  %v5940_v31 = vld [vmem:[#allocation13 + $0x2a4] ss:$16 sps:$4 sm:$0xff]  }
 0x5cf   :  { %3383 = vmatprep.subr.bf16.mxu0 %v5886_v60  ;;  %3465 = vmatprep.subr.bf16.mxu1 %v5889_v61  ;;  %v5943_v60 = vld [vmem:[#allocation13 + $0x2ac] ss:$16 sps:$4 sm:$0xff]   ;;  %v5938_v61 = vld [vmem:[#allocation13 + $0x2a0] ss:$16 sps:$4 sm:$0xff]  }
 0x5d2   :  { %3384 = vmatpush1.bf16.msra.mxu0 %v5884_v62  ;;  %3466 = vmatpush1.bf16.msra.mxu1 %v5887_v63  ;;  %v5941_v62 = vld [vmem:[#allocation13 + $0x2a8] ss:$16 sps:$4 sm:$0xff]   ;;  %v5946_v63 = vld [vmem:[#allocation13 + $0x2c4] ss:$16 sps:$4 sm:$0xff]  }
 0x5d3   :  { %3385 = vmatprep.subr.bf16.mxu0 %v5892_v1  ;;  %3467 = vmatprep.subr.bf16.mxu1 %v5895_v33  ;;  %v5949_v1 = vld [vmem:[#allocation13 + $0x2cc] ss:$16 sps:$4 sm:$0xff]   ;;  %v5944_v33 = vld [vmem:[#allocation13 + $0x2c0] ss:$16 sps:$4 sm:$0xff]  }
 0x5d6   :  { %3386 = vmatpush1.bf16.msra.mxu0 %v5890_v46  ;;  %3468 = vmatpush1.bf16.msra.mxu1 %v5893_v2  ;;  %v5947_v46 = vld [vmem:[#allocation13 + $0x2c8] ss:$16 sps:$4 sm:$0xff]   ;;  %v5952_v2 = vld [vmem:[#allocation13 + $0x2e4] ss:$16 sps:$4 sm:$0xff]  }
 0x5d7   :  { %3387 = vmatprep.subr.bf16.mxu0 %v5898_v3  ;;  %3469 = vmatprep.subr.bf16.mxu1 %v5901_v4  ;;  %v5955_v3 = vld [vmem:[#allocation13 + $0x2ec] ss:$16 sps:$4 sm:$0xff]   ;;  %v5950_v4 = vld [vmem:[#allocation13 + $0x2e0] ss:$16 sps:$4 sm:$0xff]  }
 0x5da   :  { %3388 = vmatpush1.bf16.msra.mxu0 %v5896_v5  ;;  %3470 = vmatpush1.bf16.msra.mxu1 %v5899_v6  ;;  %v5953_v5 = vld [vmem:[#allocation13 + $0x2e8] ss:$16 sps:$4 sm:$0xff]   ;;  %v5958_v6 = vld [vmem:[#allocation13 + $0x304] ss:$16 sps:$4 sm:$0xff]  }
 0x5db   :  { %3389 = vmatprep.subr.bf16.mxu0 %v5904_v7  ;;  %3471 = vmatprep.subr.bf16.mxu1 %v5907_v8  ;;  %v5961_v7 = vld [vmem:[#allocation13 + $0x30c] ss:$16 sps:$4 sm:$0xff]   ;;  %v5956_v8 = vld [vmem:[#allocation13 + $0x300] ss:$16 sps:$4 sm:$0xff]  }
 0x5de   :  { %3390 = vmatpush1.bf16.msra.mxu0 %v5902_v9  ;;  %3472 = vmatpush1.bf16.msra.mxu1 %v5905_v10  ;;  %v5959_v9 = vld [vmem:[#allocation13 + $0x308] ss:$16 sps:$4 sm:$0xff]   ;;  %v5964_v10 = vld [vmem:[#allocation13 + $0x324] ss:$16 sps:$4 sm:$0xff]  }
 0x5df   :  { %3400 = vmatprep.subr.bf16.mxu0 %v5910_v12  ;;  %3482 = vmatprep.subr.bf16.mxu1 %v5913_v13  ;;  %v5967_v12 = vld [vmem:[#allocation13 + $0x32c] ss:$16 sps:$4 sm:$0xff]   ;;  %v5962_v13 = vld [vmem:[#allocation13 + $0x320] ss:$16 sps:$4 sm:$0xff]  }
 0x674   :  { %v2534_v18 = vpop.f32.mrb[20].mxu0  ;;  %v6790_v19 = vpop.f32.mrb[20].mxu1 }
 0x675   :  { %v2535_v21 = vadd.f32 %v2534_v18, %v2471_v15  ;;  %v2536_v22 = vpop.f32.mrb[21].mxu0  ;;  %v2577_v24 = vpop.f32.mrb[21].mxu1  ;;  %v5965_v15 = vld [vmem:[#allocation13 + $0x328] ss:$16 sps:$4 sm:$0xff]   ;;  %v5968_v18 = vld [vmem:[#allocation13 + $0x340] ss:$16 sps:$4 sm:$0xff]  }
 0x676   :  { %v2537_v25 = vadd.f32 %v2536_v22, %v2475_v16  ;;  %v2538_v26 = vpop.f32.mrb[22].mxu0  ;;  %v2578_v27 = vadd.f32 %v2577_v24, %v2483_v17  ;;  %v2579_v29 = vpop.f32.mrb[22].mxu1  ;;  %v5970_v16 = vld [vmem:[#allocation13 + $0x344] ss:$16 sps:$4 sm:$0xff]   ;;  %v5973_v17 = vld [vmem:[#allocation13 + $0x34c] ss:$16 sps:$4 sm:$0xff]  }
 0x677   :  { %v2582_v30 = vmax.f32 %v2535_v21, 0.0  ;;  %v2539_v20 = vpop.f32.mrb[23].mxu0  ;;  %v2580_v35 = vpop.f32.mrb[23].mxu1  ;;  %v5971_v21 = vld [vmem:[#allocation13 + $0x348] ss:$16 sps:$4 sm:$0xff]  }
 0x678   :  { %v2583_v37 = vmax.f32 %v2537_v25, 0.0  ;;  %v2585_v38 = vmax.f32 %v2578_v27, 0.0  ;;  %v5976_v22 = vld [vmem:[#allocation13 + $0x364] ss:$16 sps:$4 sm:$0xff]   ;;  %v5979_v24 = vld [vmem:[#allocation13 + $0x36c] ss:$16 sps:$4 sm:$0xff]  }
 0x679   :  { %v2715_v42 = vpack.c.bf16 %v2582_v30, %v2582_v30  ;;  %v5974_v25 = vld [vmem:[#allocation13 + $0x360] ss:$16 sps:$4 sm:$0xff]   ;;  %v5977_v26 = vld [vmem:[#allocation13 + $0x368] ss:$16 sps:$4 sm:$0xff]   ;;  %v5982_v27 = vld [vmem:[#allocation13 + $0x384] ss:$16 sps:$4 sm:$0xff]  }
 0x67a   :  { %v2716_v39 = vpack.c.bf16 %v2583_v37, %v2583_v37  ;;  %v2718_v45 = vpack.c.bf16 %v2585_v38, %v2585_v38  ;;  %v5985_v29 = vld [vmem:[#allocation13 + $0x38c] ss:$16 sps:$4 sm:$0xff]   ;;  %v5980_v30 = vld [vmem:[#allocation13 + $0x380] ss:$16 sps:$4 sm:$0xff]   ;;  %v5983_v20 = vld [vmem:[#allocation13 + $0x388] ss:$16 sps:$4 sm:$0xff]  }
 0x67b   :  { %v5988_v35 = vld [vmem:[#allocation13 + $0x3a4] ss:$16 sps:$4 sm:$0xff]   ;;  %v5991_v37 = vld [vmem:[#allocation13 + $0x3ac] ss:$16 sps:$4 sm:$0xff]   ;;  %v5986_v38 = vld [vmem:[#allocation13 + $0x3a0] ss:$16 sps:$4 sm:$0xff]  }
 0x67c   :  { %3391 = vmatprep.mubr.bf16.mxu0 %v2716_v39  ;;  %3473 = vmatprep.mubr.bf16.mxu1 %v2716_v39  ;;  %v5989_v39 = vld [vmem:[#allocation13 + $0x3a8] ss:$16 sps:$4 sm:$0xff]  }
 0x67d   :  { %3392 = vmatmul.mubr.bf16.vlgmr.msra.gmra.mrb[24].mxu0 %v2715_v42  ;;  %3474 = vmatmul.mubr.bf16.vlgmr.msra.gmra.mrb[24].mxu1 %v2715_v42  ;;  %v5997_v42 = vld [vmem:[#allocation13 + $0x3cc] ss:$16 sps:$4 sm:$0xff]  }
 0x67e   :  { %3401 = vmatpush1.bf16.msra.mxu0 %v5908_v40  ;;  %3483 = vmatpush1.bf16.msra.mxu1 %v5911_v41  ;;  %v2479_v40 = vrot.slane %v6782_v14, %v6739_v50  ;;  %v5994_v41 = vld [vmem:[#allocation13 + $0x3c4] ss:$16 sps:$4 sm:$0xff]  }
 0x67f   :  { %3402 = vmatprep.subr.bf16.mxu0 %v5916_v43  ;;  %3484 = vmatprep.subr.bf16.mxu1 %v5919_v44  ;;  %v5992_v43 = vld [vmem:[#allocation13 + $0x3c0] ss:$16 sps:$4 sm:$0xff]   ;;  %v5995_v44 = vld [vmem:[#allocation13 + $0x3c8] ss:$16 sps:$4 sm:$0xff]  }
 0x680   :  { %3432 = vmatprep.mubr.bf16.mxu0 %v2718_v45  ;;  %3514 = vmatprep.mubr.bf16.mxu1 %v2718_v45  ;;  %v2576_v45 = vadd.f32 %v6790_v19, %v2479_v40  ;;  %v6806_v40 = vld [vmem:[#allocation14] sm:$0xf] }
 0x682   :  { %3403 = vmatpush1.bf16.msra.mxu0 %v5914_v47  ;;  %3485 = vmatpush1.bf16.msra.mxu1 %v5917_v48  ;;  %v6000_v47 = vld [vmem:[#allocation13 + $0x3e4] ss:$16 sps:$4 sm:$0xff]   ;;  %v6003_v48 = vld [vmem:[#allocation13 + $0x3ec] ss:$16 sps:$4 sm:$0xff]  }
 0x683   :  { %3404 = vmatprep.subr.bf16.mxu0 %v5922_v49  ;;  %3486 = vmatprep.subr.bf16.mxu1 %v5925_v51  ;;  %v5998_v49 = vld [vmem:[#allocation13 + $0x3e0] ss:$16 sps:$4 sm:$0xff]   ;;  %v6001_v51 = vld [vmem:[#allocation13 + $0x3e8] ss:$16 sps:$4 sm:$0xff]  }
 0x686   :  { %3405 = vmatpush1.bf16.msra.mxu0 %v5920_v52  ;;  %3487 = vmatpush1.bf16.msra.mxu1 %v5923_v53  ;;  %v2584_v52 = vmax.f32 %v2576_v45, 0.0 }
 0x687   :  { %3406 = vmatprep.subr.bf16.mxu0 %v5928_v54  ;;  %3488 = vmatprep.subr.bf16.mxu1 %v5931_v55 }
 0x688   :  { %v2717_v14 = vpack.c.bf16 %v2584_v52, %v2584_v52 }
 0x68a   :  { %3407 = vmatpush1.bf16.msra.mxu0 %v5926_v56  ;;  %3489 = vmatpush1.bf16.msra.mxu1 %v5929_v57 }
 0x68b   :  { %3408 = vmatprep.subr.bf16.mxu0 %v5934_v23  ;;  %3490 = vmatprep.subr.bf16.mxu1 %v5937_v28 }
 0x68e   :  { %3409 = vmatpush1.bf16.msra.mxu0 %v5932_v58  ;;  %3491 = vmatpush1.bf16.msra.mxu1 %v5935_v59 }
 0x68f   :  { %3410 = vmatprep.subr.bf16.mxu0 %v5940_v31  ;;  %3492 = vmatprep.subr.bf16.mxu1 %v5943_v60  ;;  %v6006_v31 = vld [vmem:[#allocation16 + $0x4] ss:$8 sps:$4 sm:$0xff]  }
 0x692   :  { %3411 = vmatpush1.bf16.msra.mxu0 %v5938_v61  ;;  %3493 = vmatpush1.bf16.msra.mxu1 %v5941_v62 }
 0x693   :  { %3412 = vmatprep.subr.bf16.mxu0 %v5946_v63  ;;  %3494 = vmatprep.subr.bf16.mxu1 %v5949_v1  ;;  %v6004_v1 = vld [vmem:[#allocation16] ss:$8 sps:$4 sm:$0xff]  }
 0x696   :  { %3413 = vmatpush1.bf16.msra.mxu0 %v5944_v33  ;;  %3495 = vmatpush1.bf16.msra.mxu1 %v5947_v46  ;;  %v6009_v33 = vld [vmem:[#allocation16 + $0x14] ss:$8 sps:$4 sm:$0xff]   ;;  %v6007_v46 = vld [vmem:[#allocation16 + $0x10] ss:$8 sps:$4 sm:$0xff]  }
 0x697   :  { %3414 = vmatprep.subr.bf16.mxu0 %v5952_v2  ;;  %3496 = vmatprep.subr.bf16.mxu1 %v5955_v3  ;;  %v6012_v2 = vld [vmem:[#allocation16 + $0x24] ss:$8 sps:$4 sm:$0xff]   ;;  %v6010_v3 = vld [vmem:[#allocation16 + $0x20] ss:$8 sps:$4 sm:$0xff]  }
 0x69a   :  { %3415 = vmatpush1.bf16.msra.mxu0 %v5950_v4  ;;  %3497 = vmatpush1.bf16.msra.mxu1 %v5953_v5  ;;  %v6015_v4 = vld [vmem:[#allocation16 + $0x34] ss:$8 sps:$4 sm:$0xff]   ;;  %v6013_v5 = vld [vmem:[#allocation16 + $0x30] ss:$8 sps:$4 sm:$0xff]  }
 0x69b   :  { %3416 = vmatprep.subr.bf16.mxu0 %v5958_v6  ;;  %3498 = vmatprep.subr.bf16.mxu1 %v5961_v7  ;;  %v6018_v6 = vld [vmem:[#allocation16 + $0x44] ss:$8 sps:$4 sm:$0xff]   ;;  %v6016_v7 = vld [vmem:[#allocation16 + $0x40] ss:$8 sps:$4 sm:$0xff]  }
 0x69e   :  { %3417 = vmatpush1.bf16.msra.mxu0 %v5956_v8  ;;  %3499 = vmatpush1.bf16.msra.mxu1 %v5959_v9  ;;  %v6021_v8 = vld [vmem:[#allocation16 + $0x54] ss:$8 sps:$4 sm:$0xff]   ;;  %v6019_v9 = vld [vmem:[#allocation16 + $0x50] ss:$8 sps:$4 sm:$0xff]  }
 0x69f   :  { %3418 = vmatprep.subr.bf16.mxu0 %v5964_v10  ;;  %3500 = vmatprep.subr.bf16.mxu1 %v5967_v12  ;;  %v6024_v10 = vld [vmem:[#allocation16 + $0x64] ss:$8 sps:$4 sm:$0xff]   ;;  %v6027_v12 = vld [vmem:[#allocation16 + $0x74] ss:$8 sps:$4 sm:$0xff]  }
 0x6a2   :  { %3419 = vmatpush1.bf16.msra.mxu0 %v5962_v13  ;;  %3501 = vmatpush1.bf16.msra.mxu1 %v5965_v15  ;;  %v6025_v13 = vld [vmem:[#allocation16 + $0x70] ss:$8 sps:$4 sm:$0xff]   ;;  %v6030_v15 = vld [vmem:[#allocation16 + $0x84] ss:$8 sps:$4 sm:$0xff]  }
 0x6a3   :  { %3420 = vmatprep.subr.bf16.mxu0 %v5970_v16  ;;  %3502 = vmatprep.subr.bf16.mxu1 %v5973_v17  ;;  %v6028_v16 = vld [vmem:[#allocation16 + $0x80] ss:$8 sps:$4 sm:$0xff]   ;;  %v6033_v17 = vld [vmem:[#allocation16 + $0x94] ss:$8 sps:$4 sm:$0xff]  }
 0x6a6   :  { %3421 = vmatpush1.bf16.msra.mxu0 %v5968_v18  ;;  %3503 = vmatpush1.bf16.msra.mxu1 %v5971_v21  ;;  %v6031_v18 = vld [vmem:[#allocation16 + $0x90] ss:$8 sps:$4 sm:$0xff]   ;;  %v6036_v21 = vld [vmem:[#allocation16 + $0xa4] ss:$8 sps:$4 sm:$0xff]  }
 0x6a7   :  { %3422 = vmatprep.subr.bf16.mxu0 %v5976_v22  ;;  %3504 = vmatprep.subr.bf16.mxu1 %v5979_v24  ;;  %v6034_v22 = vld [vmem:[#allocation16 + $0xa0] ss:$8 sps:$4 sm:$0xff]   ;;  %v6039_v24 = vld [vmem:[#allocation16 + $0xb4] ss:$8 sps:$4 sm:$0xff]  }
 0x6aa   :  { %3423 = vmatpush1.bf16.msra.mxu0 %v5974_v25  ;;  %3505 = vmatpush1.bf16.msra.mxu1 %v5977_v26  ;;  %v6037_v25 = vld [vmem:[#allocation16 + $0xb0] ss:$8 sps:$4 sm:$0xff]   ;;  %v6042_v26 = vld [vmem:[#allocation16 + $0xc4] ss:$8 sps:$4 sm:$0xff]  }
 0x6ab   :  { %3424 = vmatprep.subr.bf16.mxu0 %v5982_v27  ;;  %3506 = vmatprep.subr.bf16.mxu1 %v5985_v29  ;;  %v6040_v27 = vld [vmem:[#allocation16 + $0xc0] ss:$8 sps:$4 sm:$0xff]   ;;  %v6045_v29 = vld [vmem:[#allocation16 + $0xd4] ss:$8 sps:$4 sm:$0xff]  }
 0x6ae   :  { %3425 = vmatpush1.bf16.msra.mxu0 %v5980_v30  ;;  %3507 = vmatpush1.bf16.msra.mxu1 %v5983_v20  ;;  %v6043_v30 = vld [vmem:[#allocation16 + $0xd0] ss:$8 sps:$4 sm:$0xff]   ;;  %v6048_v20 = vld [vmem:[#allocation16 + $0xe4] ss:$8 sps:$4 sm:$0xff]  }
 0x6af   :  { %3426 = vmatprep.subr.bf16.mxu0 %v5988_v35  ;;  %3508 = vmatprep.subr.bf16.mxu1 %v5991_v37  ;;  %v6046_v35 = vld [vmem:[#allocation16 + $0xe0] ss:$8 sps:$4 sm:$0xff]   ;;  %v6051_v37 = vld [vmem:[#allocation16 + $0xf4] ss:$8 sps:$4 sm:$0xff]  }
 0x6b2   :  { %3427 = vmatpush1.bf16.msra.mxu0 %v5986_v38  ;;  %3509 = vmatpush1.bf16.msra.mxu1 %v5989_v39  ;;  %v6049_v38 = vld [vmem:[#allocation16 + $0xf0] ss:$8 sps:$4 sm:$0xff]   ;;  %v6054_v39 = vld [vmem:[#allocation16 + $0x104] ss:$8 sps:$4 sm:$0xff]  }
 0x6b3   :  { %3428 = vmatprep.subr.bf16.mxu0 %v5994_v41  ;;  %3510 = vmatprep.subr.bf16.mxu1 %v5997_v42  ;;  %v3531_v41 = vrot.slane %v6806_v40, %v6720_v32  ;;  %v3535_v42 = vrot.slane %v6806_v40, %v6725_v34 }
 0x6b6   :  { %3429 = vmatpush1.bf16.msra.mxu0 %v5992_v43  ;;  %3511 = vmatpush1.bf16.msra.mxu1 %v5995_v44  ;;  %v3543_v43 = vrot.slane %v6806_v40, %v6730_v36  ;;  %v6057_v36 = vld [vmem:[#allocation16 + $0x114] ss:$8 sps:$4 sm:$0xff]  }
 0x6b7   :  { %3430 = vmatprep.subr.bf16.mxu0 %v6000_v47  ;;  %3512 = vmatprep.subr.bf16.mxu1 %v6003_v48 }
 0x6ba   :  { %3431 = vmatpush1.bf16.msra.mxu0 %v5998_v49  ;;  %3513 = vmatpush1.bf16.msra.mxu1 %v6001_v51 }
 0x6bd   :  { %3433 = vmatmul.mubr.bf16.vlgmr.msra.gmra.mrb[24].mxu0 %v2717_v14  ;;  %3515 = vmatmul.mubr.bf16.vlgmr.msra.gmra.mrb[24].mxu1 %v2717_v14 }
 0x6be   :  { %3592 = vmatprep.mubr.bf16.mxu0 %v6433_v0  ;;  %3633 = vmatprep.mubr.bf16.mxu1 %v6433_v0 }
 0x790   :  { %v3434_v19 = vpop.f32.mrb[24].mxu0  ;;  %v3516_v53 = vpop.f32.mrb[24].mxu1 }
 0x791   :  { %v3523_v54 = vpack.c.bf16 %v3434_v19, %v3434_v19  ;;  %v3525_v55 = vpack.c.bf16 %v3516_v53, %v3516_v53  ;;  %v3436_v56 = vpop.f32.mrb[25].mxu0  ;;  %v3518_v57 = vpop.f32.mrb[25].mxu1 }
 0x792   :  { %v3524_v23 = vpack.c.bf16 %v3436_v56, %v3436_v56  ;;  %v3526_v28 = vpack.c.bf16 %v3518_v57, %v3518_v57  ;;  %v3438_v58 = vpop.f32.mrb[26].mxu0  ;;  %v3520_v59 = vpop.f32.mrb[26].mxu1 }
 0x793   :  { %v3549_v60 = vsel %vm367_vm1, %v3523_v54, 0  ;;  %v3555_v61 = vsel %vm367_vm1, %v3525_v55, 0  ;;  %v3439_v62 = vpop.f32.mrb[27].mxu0  ;;  %v3521_v63 = vpop.f32.mrb[27].mxu1 }
 0x794   :  { %5155 = vmatprep.subr.msk.bf16.mxu0 %vm367_vm1, %v3524_v23  ;;  %5157 = vmatprep.subr.msk.bf16.mxu1 %vm367_vm1, %v3526_v28  ;;  %v6052_v28 = vld [vmem:[#allocation16 + $0x100] ss:$8 sps:$4 sm:$0xff]   ;;  %v6063_v62 = vld [vmem:[#allocation16 + $0x134] ss:$8 sps:$4 sm:$0xff]   ;;  %v6061_v63 = vld [vmem:[#allocation16 + $0x130] ss:$8 sps:$4 sm:$0xff]  }
 0x795   :  { %3561 = vmatpush1.bf16.msra.mxu0 %v3549_v60  ;;  %3602 = vmatpush1.bf16.msra.mxu1 %v3555_v61  ;;  %v6060_v60 = vld [vmem:[#allocation16 + $0x124] ss:$8 sps:$4 sm:$0xff]   ;;  %v6058_v61 = vld [vmem:[#allocation16 + $0x120] ss:$8 sps:$4 sm:$0xff]  }
 0x796   :  { %4035 = vmatprep.subr.bf16.mxu0 %v6006_v31  ;;  %v6055_v31 = vld [vmem:[#allocation16 + $0x110] ss:$8 sps:$4 sm:$0xff]  }
 0x798   :  { %5156 = vmatmul.mubr.msk.bf16.vlgmr.msra.gmra.mrb[28].mxu0 %vm363_vm2, %v6776_v11  ;;  %5158 = vmatmul.mubr.msk.bf16.vlgmr.msra.gmra.mrb[28].mxu1 %vm363_vm2, %v6776_v11 }
 0x799   :  { %4036 = vmatpush1.bf16.msra.mxu0 %v6004_v1  ;;  %4168 = vmatprep.mubr.bf16.mxu1 %v6433_v0  ;;  %v6022_v0 = vld [vmem:[#allocation16 + $0x60] ss:$8 sps:$4 sm:$0xff]   ;;  %v6066_v1 = vld [vmem:[#allocation16 + $0x144] ss:$8 sps:$4 sm:$0xff]  }
 0x79a   :  { %4037 = vmatprep.subr.bf16.mxu0 %v6009_v33  ;;  %v6064_v33 = vld [vmem:[#allocation16 + $0x140] ss:$8 sps:$4 sm:$0xff]  }
 0x79d   :  { %4038 = vmatpush1.bf16.msra.mxu0 %v6007_v46  ;;  %v6069_v46 = vld [vmem:[#allocation16 + $0x154] ss:$8 sps:$4 sm:$0xff]  }
 0x79e   :  { %4039 = vmatprep.subr.bf16.mxu0 %v6012_v2  ;;  %v6067_v2 = vld [vmem:[#allocation16 + $0x150] ss:$8 sps:$4 sm:$0xff]  }
 0x7a1   :  { %4040 = vmatpush1.bf16.msra.mxu0 %v6010_v3  ;;  %v6072_v3 = vld [vmem:[#allocation16 + $0x164] ss:$8 sps:$4 sm:$0xff]  }
 0x7a2   :  { %4041 = vmatprep.subr.bf16.mxu0 %v6015_v4  ;;  %v6070_v4 = vld [vmem:[#allocation16 + $0x160] ss:$8 sps:$4 sm:$0xff]  }
 0x7a5   :  { %4042 = vmatpush1.bf16.msra.mxu0 %v6013_v5  ;;  %v6075_v5 = vld [vmem:[#allocation16 + $0x174] ss:$8 sps:$4 sm:$0xff]  }
 0x7a6   :  { %4043 = vmatprep.subr.bf16.mxu0 %v6018_v6  ;;  %v6073_v6 = vld [vmem:[#allocation16 + $0x170] ss:$8 sps:$4 sm:$0xff]  }
 0x7a9   :  { %4044 = vmatpush1.bf16.msra.mxu0 %v6016_v7  ;;  %v6078_v7 = vld [vmem:[#allocation16 + $0x184] ss:$8 sps:$4 sm:$0xff]  }
 0x7aa   :  { %4045 = vmatprep.subr.bf16.mxu0 %v6021_v8  ;;  %v6076_v8 = vld [vmem:[#allocation16 + $0x180] ss:$8 sps:$4 sm:$0xff]  }
 0x7ad   :  { %4046 = vmatpush1.bf16.msra.mxu0 %v6019_v9  ;;  %v6081_v9 = vld [vmem:[#allocation16 + $0x194] ss:$8 sps:$4 sm:$0xff]  }
 0x7ae   :  { %4047 = vmatprep.subr.bf16.mxu0 %v6024_v10  ;;  %v6079_v10 = vld [vmem:[#allocation16 + $0x190] ss:$8 sps:$4 sm:$0xff]  }
 0x7b1   :  { %4048 = vmatpush1.bf16.msra.mxu0 %v6022_v0  ;;  %v6084_v0 = vld [vmem:[#allocation16 + $0x1a4] ss:$8 sps:$4 sm:$0xff]  }
 0x7b2   :  { %4049 = vmatprep.subr.bf16.mxu0 %v6027_v12  ;;  %v6082_v12 = vld [vmem:[#allocation16 + $0x1a0] ss:$8 sps:$4 sm:$0xff]  }
 0x7b5   :  { %4050 = vmatpush1.bf16.msra.mxu0 %v6025_v13  ;;  %v6087_v13 = vld [vmem:[#allocation16 + $0x1b4] ss:$8 sps:$4 sm:$0xff]  }
 0x7b6   :  { %4051 = vmatprep.subr.bf16.mxu0 %v6030_v15  ;;  %v6085_v15 = vld [vmem:[#allocation16 + $0x1b0] ss:$8 sps:$4 sm:$0xff]  }
 0x7b9   :  { %4052 = vmatpush1.bf16.msra.mxu0 %v6028_v16  ;;  %v6090_v16 = vld [vmem:[#allocation16 + $0x1c4] ss:$8 sps:$4 sm:$0xff]  }
 0x7ba   :  { %4053 = vmatprep.subr.bf16.mxu0 %v6033_v17  ;;  %v6088_v17 = vld [vmem:[#allocation16 + $0x1c0] ss:$8 sps:$4 sm:$0xff]  }
 0x7bd   :  { %4054 = vmatpush1.bf16.msra.mxu0 %v6031_v18  ;;  %v6093_v18 = vld [vmem:[#allocation16 + $0x1d4] ss:$8 sps:$4 sm:$0xff]  }
 0x7be   :  { %4055 = vmatprep.subr.bf16.mxu0 %v6036_v21  ;;  %v6091_v21 = vld [vmem:[#allocation16 + $0x1d0] ss:$8 sps:$4 sm:$0xff]  }
 0x7c1   :  { %4056 = vmatpush1.bf16.msra.mxu0 %v6034_v22  ;;  %v3539_v22 = vrot.slane %v6806_v40, %v6739_v50  ;;  %v6100_v40 = vld [vmem:[%s6976_s12 + $0x40] sm:$0xff]  }
 0x7c2   :  { %4057 = vmatprep.subr.bf16.mxu0 %v6039_v24  ;;  %v6096_v24 = vld [vmem:[#allocation16 + $0x1e4] ss:$8 sps:$4 sm:$0xff]  }
 0x7c5   :  { %4058 = vmatpush1.bf16.msra.mxu0 %v6037_v25  ;;  %v6094_v25 = vld [vmem:[#allocation16 + $0x1e0] ss:$8 sps:$4 sm:$0xff]  }
 0x7c6   :  { %4059 = vmatprep.subr.bf16.mxu0 %v6042_v26 }
 0x7c9   :  { %4060 = vmatpush1.bf16.msra.mxu0 %v6040_v27  ;;  %v6099_v27 = vld [vmem:[#allocation16 + $0x1f4] ss:$8 sps:$4 sm:$0xff]  }
 0x7ca   :  { %4061 = vmatprep.subr.bf16.mxu0 %v6045_v29  ;;  %v6097_v29 = vld [vmem:[#allocation16 + $0x1f0] ss:$8 sps:$4 sm:$0xff]  }
 0x7cd   :  { %4062 = vmatpush1.bf16.msra.mxu0 %v6043_v30 }
 0x7ce   :  { %4063 = vmatprep.subr.bf16.mxu0 %v6048_v20 }
 0x7d1   :  { %4064 = vmatpush1.bf16.msra.mxu0 %v6046_v35 }
 0x7d2   :  { %4065 = vmatprep.subr.bf16.mxu0 %v6051_v37 }
 0x7d5   :  { %4066 = vmatpush1.bf16.msra.mxu0 %v6049_v38 }
 0x7d6   :  { %4076 = vmatprep.subr.bf16.mxu0 %v6054_v39 }
 0x86b   :  { %v3594_v44 = vpop.f32.mrb[28].mxu0  ;;  %v6814_v45 = vpop.f32.mrb[28].mxu1 }
 0x86c   :  { %v3595_v47 = vadd.f32 %v3594_v44, %v3531_v41  ;;  %v3596_v48 = vpop.f32.mrb[29].mxu0  ;;  %v3637_v49 = vpop.f32.mrb[29].mxu1  ;;  %v3636_v26 = vadd.f32 %v6814_v45, %v3539_v22  ;;  %v6102_v44 = vld [vmem:[%s6976_s12 + $0x48] sm:$0xff]  }
 0x86d   :  { %v3597_v51 = vadd.f32 %v3596_v48, %v3535_v42  ;;  %v3598_v52 = vpop.f32.mrb[30].mxu0  ;;  %v3638_v14 = vadd.f32 %v3637_v49, %v3543_v43  ;;  %v3639_v19 = vpop.f32.mrb[30].mxu1  ;;  %v6101_v43 = vld [vmem:[%s6976_s12] sm:$0xff]   ;;  %v6103_v45 = vld [vmem:[%s6976_s12 + $0x8] sm:$0xff]   ;;  %v6105_v48 = vld [vmem:[%s6976_s12 + $0x10] sm:$0xff]  }
 0x86e   :  { %v3642_v53 = vmax.f32 %v3595_v47, 0.0  ;;  %v3599_v54 = vpop.f32.mrb[31].mxu0  ;;  %v3640_v55 = vpop.f32.mrb[31].mxu1  ;;  %v3644_v30 = vmax.f32 %v3636_v26, 0.0  ;;  %v6104_v47 = vld [vmem:[%s6976_s12 + $0x50] sm:$0xff]   ;;  %v6107_v49 = vld [vmem:[%s6976_s12 + $0x18] sm:$0xff]  }
 0x86f   :  { %v3643_v56 = vmax.f32 %v3597_v51, 0.0  ;;  %v3645_v57 = vmax.f32 %v3638_v14, 0.0  ;;  %v6108_v51 = vld [vmem:[%s6976_s12 + $0x60] sm:$0xff]   ;;  %v6110_v14 = vld [vmem:[%s6976_s12 + $0x68] sm:$0xff]   ;;  %v6113_v54 = vld [vmem:[%s6976_s12 + $0x30] sm:$0xff]  }
 0x870   :  { %v3711_v59 = vpack.c.bf16 %v3642_v53, %v3642_v53  ;;  %v3713_v20 = vpack.c.bf16 %v3644_v30, %v3644_v30  ;;  %v6109_v52 = vld [vmem:[%s6976_s12 + $0x20] sm:$0xff]   ;;  %v6111_v19 = vld [vmem:[%s6976_s12 + $0x28] sm:$0xff]   ;;  %v6112_v53 = vld [vmem:[%s6976_s12 + $0x70] sm:$0xff]  }
 0x871   :  { %v3712_v23 = vpack.c.bf16 %v3643_v56, %v3643_v56  ;;  %v3714_v58 = vpack.c.bf16 %v3645_v57, %v3645_v57  ;;  %v6114_v55 = vld [vmem:[%s6976_s12 + $0x78] sm:$0xff]   ;;  %v3710_v57 = vld [vmem:[#allocation17] sm:$0x3] }
 0x872   :  { %v6115_v56 = vld [vmem:[%s6976_s12 + $0x38] sm:$0xff]  }
 0x873   :  { %4067 = vmatprep.mubr.bf16.mxu0 %v3712_v23  ;;  %v4123_v23 = vrot.slane %v3710_v57, %v6720_v32 }
 0x874   :  { %4068 = vmatmul.mubr.bf16.vlgmr.msra.gmra.mrb[32].mxu0 %v3711_v59 }
 0x875   :  { %4077 = vmatpush1.bf16.msra.mxu0 %v6052_v28  ;;  %4108 = vmatprep.mubr.bf16.mxu0 %v3714_v58  ;;  %v4127_v28 = vrot.slane %v3710_v57, %v6725_v34 }
 0x876   :  { %4078 = vmatprep.subr.bf16.mxu0 %v6057_v36 }
 0x879   :  { %4079 = vmatpush1.bf16.msra.mxu0 %v6055_v31 }
 0x87a   :  { %4080 = vmatprep.subr.bf16.mxu0 %v6060_v60 }
 0x87d   :  { %4081 = vmatpush1.bf16.msra.mxu0 %v6058_v61 }
 0x87e   :  { %4082 = vmatprep.subr.bf16.mxu0 %v6063_v62 }
 0x881   :  { %4083 = vmatpush1.bf16.msra.mxu0 %v6061_v63 }
 0x882   :  { %4084 = vmatprep.subr.bf16.mxu0 %v6066_v1 }
 0x885   :  { %4085 = vmatpush1.bf16.msra.mxu0 %v6064_v33 }
 0x886   :  { %4086 = vmatprep.subr.bf16.mxu0 %v6069_v46  ;;  %v6434_v46 = vmov 0.0  }
 0x889   :  { %4087 = vmatpush1.bf16.msra.mxu0 %v6067_v2 }
 0x88a   :  { %4088 = vmatprep.subr.bf16.mxu0 %v6072_v3 }
 0x88d   :  { %4089 = vmatpush1.bf16.msra.mxu0 %v6070_v4 }
 0x88e   :  { %4090 = vmatprep.subr.bf16.mxu0 %v6075_v5 }
 0x891   :  { %4091 = vmatpush1.bf16.msra.mxu0 %v6073_v6 }
 0x892   :  { %4092 = vmatprep.subr.bf16.mxu0 %v6078_v7  ;;  %v6116_v7 = vld [vmem:[#allocation19] sm:$0xff]  }
 0x895   :  { %4093 = vmatpush1.bf16.msra.mxu0 %v6076_v8  ;;  %v6881_v8 = vld [vmem:[%s6990_s25] sm:$0xf] }
 0x896   :  { %4094 = vmatprep.subr.bf16.mxu0 %v6081_v9  ;;  %v6117_v9 = vld [vmem:[#allocation19 + $0x8] sm:$0xff]  }
 0x899   :  { %4095 = vmatpush1.bf16.msra.mxu0 %v6079_v10  ;;  %v6118_v10 = vld [vmem:[#allocation19 + $0x10] sm:$0xff]  }
 0x89a   :  { %4096 = vmatprep.subr.bf16.mxu0 %v6084_v0  ;;  %v6119_v0 = vld [vmem:[#allocation19 + $0x18] sm:$0xff]  }
 0x89d   :  { %4097 = vmatpush1.bf16.msra.mxu0 %v6082_v12  ;;  %v6120_v12 = vld [vmem:[#allocation19 + $0x20] sm:$0xff]  }
 0x89e   :  { %4098 = vmatprep.subr.bf16.mxu0 %v6087_v13  ;;  %v6121_v13 = vld [vmem:[#allocation19 + $0x28] sm:$0xff]  }
 0x8a1   :  { %4099 = vmatpush1.bf16.msra.mxu0 %v6085_v15  ;;  %v6122_v15 = vld [vmem:[#allocation19 + $0x30] sm:$0xff]  }
 0x8a2   :  { %4100 = vmatprep.subr.bf16.mxu0 %v6090_v16  ;;  %v6123_v16 = vld [vmem:[#allocation19 + $0x38] sm:$0xff]  }
 0x8a5   :  { %4101 = vmatpush1.bf16.msra.mxu0 %v6088_v17  ;;  %v5241_v17 = vld [vmem:[%s6977_s13] ss:$0 sm:$0xff] }
 0x8a6   :  { %4102 = vmatprep.subr.bf16.mxu0 %v6093_v18 }
 0x8a9   :  { %4103 = vmatpush1.bf16.msra.mxu0 %v6091_v21 }
 0x8aa   :  { %4104 = vmatprep.subr.bf16.mxu0 %v6096_v24 }
 0x8ad   :  { %4105 = vmatpush1.bf16.msra.mxu0 %v6094_v25 }
 0x8ae   :  { %4106 = vmatprep.subr.bf16.mxu0 %v6099_v27 }
 0x8b1   :  { %4107 = vmatpush1.bf16.msra.mxu0 %v6097_v29 }
 0x8b4   :  { %4109 = vmatmul.mubr.bf16.vlgmr.msra.gmra.mrb[32].mxu0 %v3713_v20 }
 0x987   :  { %v4110_v35 = vpop.f32.mrb[32].mxu0 }
 0x988   :  { %v4117_v37 = vpack.c.bf16 %v4110_v35, %v4110_v35  ;;  %v4112_v38 = vpop.f32.mrb[33].mxu0 }
 0x989   :  { %v4118_v39 = vpack.c.bf16 %v4112_v38, %v4112_v38  ;;  %v4114_v50 = vpop.f32.mrb[34].mxu0 }
 0x98a   :  { %v4131_v41 = vsel %vm367_vm1, %v4117_v37, 0  ;;  %v4115_v42 = vpop.f32.mrb[35].mxu0  ;;  %v6125_v50 = vld [vmem:[%s6980_s16 + $0x8] sm:$0xff]  }
 0x98b   :  { %5223 = vmatprep.subr.msk.bf16.mxu1 %vm367_vm1, %v4118_v39  ;;  %v6124_v39 = vld [vmem:[%s6980_s16] sm:$0xff]  }
 0x98c   :  { %4137 = vmatpush1.bf16.msra.mxu1 %v4131_v41  ;;  %v6127_v41 = vld [vmem:[%s6980_s16 + $0x18] sm:$0xff]   ;;  %v6128_v42 = vld [vmem:[%s6980_s16 + $0x20] sm:$0xff]  }
 0x98d   :  { %5263 = vmatprep.subr.bf16.mxu1 %v6100_v40  ;;  %v6126_v40 = vld [vmem:[%s6980_s16 + $0x10] sm:$0xff]  }
 0x98f   :  { %5224 = vmatmul.mubr.msk.bf16.vlgmr.msra.gmra.mrb[32].mxu1 %vm363_vm2, %v6776_v11  ;;  %v6106_v11 = vld [vmem:[%s6976_s12 + $0x58] sm:$0xff]  }
 0x990   :  { %5264 = vmatpush3.bf16.msra.mxu1 %v6101_v43  ;;  %v6129_v43 = vld [vmem:[%s6980_s16 + $0x28] sm:$0xff]  }
 0x991   :  { %5265 = vmatprep.subr.bf16.mxu1 %v6102_v44  ;;  %v6130_v44 = vld [vmem:[%s6980_s16 + $0x30] sm:$0xff]  }
 0x994   :  { %5266 = vmatpush3.bf16.msra.mxu1 %v6103_v45  ;;  %v6131_v45 = vld [vmem:[%s6980_s16 + $0x38] sm:$0xff]  }
 0x995   :  { %5267 = vmatprep.subr.bf16.mxu1 %v6104_v47  ;;  %v5251_v47 = vld [vmem:[%s6979_s15] ss:$0 sm:$0xff] }
 0x998   :  { %5268 = vmatpush3.bf16.msra.mxu1 %v6105_v48 }
 0x999   :  { %5269 = vmatprep.subr.bf16.mxu1 %v6106_v11 }
 0x99c   :  { %5270 = vmatpush3.bf16.msra.mxu1 %v6107_v49 }
 0x99d   :  { %5271 = vmatprep.subr.bf16.mxu1 %v6108_v51 }
 0x9a0   :  { %5272 = vmatpush3.bf16.msra.mxu1 %v6109_v52 }
 0x9a1   :  { %5273 = vmatprep.subr.bf16.mxu1 %v6110_v14 }
 0x9a4   :  { %5274 = vmatpush3.bf16.msra.mxu1 %v6111_v19 }
 0x9a5   :  { %5275 = vmatprep.subr.bf16.mxu1 %v6112_v53 }
 0x9a8   :  { %5276 = vmatpush3.bf16.msra.mxu1 %v6113_v54 }
 0x9a9   :  { %5277 = vmatprep.subr.bf16.mxu1 %v6114_v55 }
 0x9ac   :  { %5278 = vmatpush3.bf16.msra.mxu1 %v6115_v56 }
 0x9ad   :  { %5309 = vmatprep.subr.bf16.mxu1 %v6434_v46 }
 0xa62   :  { %v4170_v58 = vpop.f32.mrb[32].mxu1 }
 0xa63   :  { %v4171_v59 = vadd.f32 %v4170_v58, %v4123_v23  ;;  %v4172_v36 = vpop.f32.mrb[33].mxu1 }
 0xa64   :  { %v4173_v31 = vadd.f32 %v4172_v36, %v4127_v28  ;;  %v4174_v60 = vpop.f32.mrb[34].mxu1  ;;  %v5261_v28 = vld [vmem:[%s6981_s17] ss:$0 sm:$0xff]  ;;  %s6436_s17 = smov [#allocation20]  }
 0xa65   :  { %v4177_v61 = vmax.f32 %v4171_v59, 0.0  ;;  %v4175_v62 = vpop.f32.mrb[35].mxu1  ;;  %s4735_s29 = sshll.u32 %s6436_s17, 4  ;;  %s4736_s29 = int_to_ptr.vmem [resolvable:$true] %s4735_s29 }
 0xa66   :  { %v4178_v63 = vmax.f32 %v4173_v31, 0.0  ;;  %s6380_s1 = scalar_lea.vmem %s4736_s29, 128  ;;  %p6385_p5 = scmp.lt.s32.totalorder %s4736_s29, %s4736_s29 }
 0xa67   :  { %v4212_v33 = vpack.c.bf16 %v4177_v61, %v4177_v61  ;;  %p6381_p4 = scmp.ne.s32.totalorder %s4736_s29, %s6380_s1  ;;  %p6386_p6 = scmp.lt.s32.totalorder %s6380_s1, %s6380_s1 }
 0xa68   :  { %v4213_v1 = vpack.c.bf16 %v4178_v63, %v4178_v63 }
 0xa69   :  { %p6387_p7 = por %p6386_p6, %p6385_p5 }
 0xa6a   :  { %4342 = vmatprep.mubr.bf16.mxu1 %v4213_v1 }
 0xa6b   :  { %4343 = vmatmul.mubr.bf16.vlgmr.msra.gmra.mrb[36].mxu1 %v4212_v33  ;;  %p6388_p8 = pnand %p6387_p7, %p6381_p4 }
 0xa6c   :  { %5311 = vmatprep.mubr.msk.bf16.mxu1 %vm6435_vm3, %v6434_v46 }
 0xb3e   :  { %v5279_v32 = vpop.f32.mrb[36].mxu1 }
 0xb3f   :  { %v5280_v34 = vpop.f32.mrb[37].mxu1 }
 0xb40   :  { %v5281_v2 = vadd.f32 %v5280_v34, %v5279_v32  ;;  %v5282_v3 = vpop.f32.mrb[38].mxu1 }
 0xb41   :  { %v5283_v4 = vpop.f32.mrb[39].mxu1 }
 0xb42   :  { %v4350_v5 = vpack.c.bf16 %v5281_v2, %v5281_v2 }
 0xb44   :  { %v4358_v6 = vsel %vm367_vm1, %v4350_v5, 0 }
 0xb45   :  { %5310 = vmatpush3.bf16.msra.mxu1 %v4358_v6 }
 0xb46   :  { %5315 = vmatprep.subr.bf16.mxu1 %v6434_v46 }
 0xb48   :  { %5312 = vmatmul.mubr.msk.bf16.vlgmr.msra.gmra.mrb[40].mxu1 %vm363_vm2, %v6881_v8 }
 0xb49   :  { %5316 = vmatpush3.bf16.msra.mxu1 %v6116_v7  ;;  %5331 = vmatprep.mubr.msk.bf16.mxu1 %vm6435_vm3, %v6434_v46 }
 0xb4a   :  { %5317 = vmatprep.subr.bf16.mxu1 %v6434_v46 }
 0xb4d   :  { %5318 = vmatpush3.bf16.msra.mxu1 %v6117_v9 }
 0xb4e   :  { %5319 = vmatprep.subr.bf16.mxu1 %v6434_v46 }
 0xb51   :  { %5320 = vmatpush3.bf16.msra.mxu1 %v6118_v10 }
 0xb52   :  { %5321 = vmatprep.subr.bf16.mxu1 %v6434_v46 }
 0xb55   :  { %5322 = vmatpush3.bf16.msra.mxu1 %v6119_v0 }
 0xb56   :  { %5323 = vmatprep.subr.bf16.mxu1 %v6434_v46 }
 0xb59   :  { %5324 = vmatpush3.bf16.msra.mxu1 %v6120_v12 }
 0xb5a   :  { %5325 = vmatprep.subr.bf16.mxu1 %v6434_v46 }
 0xb5d   :  { %5326 = vmatpush3.bf16.msra.mxu1 %v6121_v13 }
 0xb5e   :  { %5327 = vmatprep.subr.bf16.mxu1 %v6434_v46 }
 0xb61   :  { %5328 = vmatpush3.bf16.msra.mxu1 %v6122_v15 }
 0xb62   :  { %5329 = vmatprep.subr.bf16.mxu1 %v6434_v46 }
 0xb65   :  { %5330 = vmatpush3.bf16.msra.mxu1 %v6123_v16 }
 0xb66   :  { %5335 = vmatprep.subr.bf16.mxu1 %v6434_v46 }
 0xc1b   :  { %v4394_v18 = vpop.f32.mrb[40].mxu1 }
 0xc1c   :  { %v4395_v21 = vadd.f32 %v5241_v17, %v4394_v18  ;;  %v5313_v22 = vpop.f32.mrb[41].mxu1 }
 0xc1d   :  { %v4397_v24 = vpop.f32.mrb[42].mxu1 }
 0xc1e   :  { %v4400_v25 = vmax.f32 %v4395_v21, 0.0  ;;  %v5314_v26 = vpop.f32.mrb[43].mxu1 }
 0xc20   :  { %v4418_v27 = vpack.c.bf16 %v4400_v25, %v4400_v25 }
 0xc22   :  { %5332 = vmatmul.mubr.bf16.vlgmr.msra.gmra.mrb[44].mxu1 %v4418_v27 }
 0xc23   :  { %5337 = vmatprep.mubr.msk.bf16.mxu1 %vm6435_vm3, %v6434_v46 }
 0xcf5   :  { %v4501_v29 = vpop.f32.mrb[44].mxu1 }
 0xcf6   :  { %v4507_v30 = vpack.c.bf16 %v4501_v29, %v4501_v29  ;;  %v5333_v20 = vpop.f32.mrb[45].mxu1 }
 0xcf7   :  { %v4504_v35 = vpop.f32.mrb[46].mxu1 }
 0xcf8   :  { %v4515_v37 = vsel %vm367_vm1, %v4507_v30, 0  ;;  %v5334_v38 = vpop.f32.mrb[47].mxu1 }
 0xcf9   :  { %5336 = vmatpush3.bf16.msra.mxu1 %v4515_v37 }
 0xcfa   :  { %5341 = vmatprep.subr.bf16.mxu1 %v6434_v46 }
 0xcfc   :  { %5338 = vmatmul.mubr.msk.bf16.vlgmr.msra.gmra.mrb[48].mxu1 %vm363_vm2, %v6881_v8 }
 0xcfd   :  { %5342 = vmatpush3.bf16.msra.mxu1 %v6124_v39  ;;  %5357 = vmatprep.mubr.msk.bf16.mxu1 %vm6435_vm3, %v6434_v46 }
 0xcfe   :  { %5343 = vmatprep.subr.bf16.mxu1 %v6434_v46 }
 0xd01   :  { %5344 = vmatpush3.bf16.msra.mxu1 %v6125_v50 }
 0xd02   :  { %5345 = vmatprep.subr.bf16.mxu1 %v6434_v46 }
 0xd05   :  { %5346 = vmatpush3.bf16.msra.mxu1 %v6126_v40 }
 0xd06   :  { %5347 = vmatprep.subr.bf16.mxu1 %v6434_v46 }
 0xd09   :  { %5348 = vmatpush3.bf16.msra.mxu1 %v6127_v41 }
 0xd0a   :  { %5349 = vmatprep.subr.bf16.mxu1 %v6434_v46 }
 0xd0d   :  { %5350 = vmatpush3.bf16.msra.mxu1 %v6128_v42 }
 0xd0e   :  { %5351 = vmatprep.subr.bf16.mxu1 %v6434_v46 }
 0xd11   :  { %5352 = vmatpush3.bf16.msra.mxu1 %v6129_v43 }
 0xd12   :  { %5353 = vmatprep.subr.bf16.mxu1 %v6434_v46 }
 0xd15   :  { %5354 = vmatpush3.bf16.msra.mxu1 %v6130_v44 }
 0xd16   :  { %5355 = vmatprep.subr.bf16.mxu1 %v6434_v46 }
 0xd19   :  { %5356 = vmatpush3.bf16.msra.mxu1 %v6131_v45 }
 0xd1a   :  { %5361 = vmatprep.subr.bf16.mxu1 %v6434_v46 }
 0xdcf   :  { %v4551_v48 = vpop.f32.mrb[48].mxu1 }
 0xdd0   :  { %v4552_v11 = vadd.f32 %v5251_v47, %v4551_v48  ;;  %v5339_v49 = vpop.f32.mrb[49].mxu1 }
 0xdd1   :  { %v4554_v51 = vpop.f32.mrb[50].mxu1 }
 0xdd2   :  { %v4557_v52 = vmax.f32 %v4552_v11, 0.0  ;;  %v5340_v14 = vpop.f32.mrb[51].mxu1 }
 0xdd4   :  { %v4575_v19 = vpack.c.bf16 %v4557_v52, %v4557_v52 }
 0xdd6   :  { %5358 = vmatmul.mubr.bf16.vlgmr.msra.gmra.mrb[52].mxu1 %v4575_v19 }
 0xdd7   :  { %5363 = vmatprep.mubr.msk.bf16.mxu1 %vm6435_vm3, %v6434_v46 }
 0xea9   :  { %v4658_v53 = vpop.f32.mrb[52].mxu1 }
 0xeaa   :  { %v4664_v54 = vpack.c.bf16 %v4658_v53, %v4658_v53  ;;  %v5359_v55 = vpop.f32.mrb[53].mxu1 }
 0xeab   :  { %v4661_v56 = vpop.f32.mrb[54].mxu1 }
 0xeac   :  { %v4672_v57 = vsel %vm367_vm1, %v4664_v54, 0  ;;  %v5360_v23 = vpop.f32.mrb[55].mxu1 }
 0xead   :  { %5362 = vmatpush3.bf16.msra.mxu1 %v4672_v57 }
 0xeb0   :  { %5364 = vmatmul.mubr.msk.bf16.vlgmr.msra.gmra.mrb[56].mxu1 %vm363_vm2, %v6881_v8 }
 0xf83   :  { %v4708_v58 = vpop.f32.mrb[56].mxu1 }
 0xf84   :  { %v4709_v59 = vadd.f32 %v5261_v28, %v4708_v58  ;;  %v5365_v36 = vpop.f32.mrb[57].mxu1 }
 0xf85   :  { %v4711_v31 = vpop.f32.mrb[58].mxu1 }
 0xf86   :  { %v4714_v60 = vmax.f32 %v4709_v59, 0.0  ;;  %v5366_v61 = vpop.f32.mrb[59].mxu1 }
 0xf88   :  { %v4716_v62 = vsel %vm4715_vm4, %v4714_v60, -inf }
 0xf89   :  { %4717 = vmax.xlane.f32.xlu0 %v4716_v62 }
0x1016   :  { %v4718_v63 = vpop.xlane.xlu0 %4717 }
0x1017   :  { %v4719_v1 = vsub.f32 %v4714_v60, %v4718_v63 }
0x1019   :  { %v4720_v33 = vmul.f32 1.442695, %v4719_v1 }
0x101b   :  { %6132 = vpow2.f32 %v4720_v33 }
0x1025   :  { %v6133_v46 = vpop.eup %6132 }
0x1026   :  { %v4722_v32 = vsel %vm4715_vm4, %v6133_v46, 0.0 }
0x1027   :  { %4723 = vadd.xlane.f32.xlu0 %v4722_v32 }
0x10b4   :  { %v4724_v34 = vpop.xlane.xlu0 %4723 }
0x10b5   :  { %6134 = vlog2.f32 %v4724_v34 }
0x10bf   :  { %v6135_v2 = vpop.eup %6134 }
0x10c0   :  { %v4726_v3 = vmul.f32 0.6931472, %v6135_v2 }
0x10c2   :  { %v4727_v4 = vsub.f32 %v4719_v1, %v4726_v3 }
0x10c4   :  { %4728 = vst.msk [vmem:[#allocation20] sm:$0xff] %vm4715_vm4, %v4727_v4 }
0x10c5   :  { %6391 = shalt.err (!%p6388_p8)
}
0x10c6   :  { %s6392_s5 = scalar_lea.hbm %s6982_s18, 128 }
0x10c7   :  { %p6393_p9 = scmp.ne.s32.totalorder %s6982_s18, %s6392_s5  ;;  %p6396_p10 = scmp.lt.u32.totalorder %s6392_s5, %s6982_s18 }
0x10c9   :  { %p6398_p11 = pnand %p6396_p10, %p6393_p9 }
0x10cb   :  { %6401 = shalt.err (!%p6398_p11)
}
0x10cc   :  { %4738 = dma.vmem_to_hbm [thread:$0]  %s4736_s29, 128, %s6982_s18, [#allocation4]  }
0x10cd   :  { %6414 = dma.done.wait [#allocation4], 128  }
0x10ce   :  { %6415 = vsyncadd [#allocation4], 4294967168 }
0x10cf   :  { %4742 = vsyncpa [#allocation3], 1 }
0x10d0   :  { %4743 = vsyncpa [#allocation6], 1 }
0x10d1   :  { %4744 = vsyncpa [#allocation9], 1 }
0x10d2   :  { %4745 = vsyncpa [#allocation12], 1 }
0x10d3   :  { %4746 = vsyncpa [#allocation15], 1 }
0x10d4   :  { %4747 = vsyncpa [#allocation18], 1 }
0x10d5   :  { %4748 = vsyncpa [#allocation4], 1 }

</bundles_post_ra>
